<compile_context>
chip_gen: v7x
topology: tpu7x:2x2x1
jax: 0.10.0
libtpu: 0.0.40
codegen_flags: <defaults>
</compile_context>

<pallas_src>
import functools

import numpy as np
import jax
import jax.numpy as jnp
from jax import lax
from jax.experimental import pallas as pl
from jax.experimental.pallas import tpu as pltpu


def _round_up(n, m):
    return ((n + m - 1) // m) * m


# ---------------------------------------------------------------------------
# Parameter setup (plain JAX glue — deterministic, no checkpoint loading)
# ---------------------------------------------------------------------------
def _spectral_normalize(w, key, n_power_iterations=5, eps=1e-12):
    """PyTorch-style spectral_norm on a 2D weight of shape (out, in)."""
    out_dim, _ = w.shape
    u = jax.random.normal(key, (out_dim,), dtype=w.dtype)
    u = u / (jnp.linalg.norm(u) + eps)
    v = None
    for _ in range(n_power_iterations):
        v = w.T @ u
        v = v / (jnp.linalg.norm(v) + eps)
        u = w @ v
        u = u / (jnp.linalg.norm(u) + eps)
    sigma = u @ (w @ v)
    return w / sigma


def _init_linear(key, in_dim, out_dim, n_power_iterations=5):
    """nn.Linear-style init + spectral norm; returns W as (in, out) plus bias."""
    kw, kb, ku = jax.random.split(key, 3)
    bound = 1.0 / np.sqrt(in_dim)
    w = jax.random.uniform(kw, (out_dim, in_dim), jnp.float32, -bound, bound)
    b = jax.random.uniform(kb, (out_dim,), jnp.float32, -bound, bound)
    w = _spectral_normalize(w, ku, n_power_iterations=n_power_iterations)
    return w.T, b  # (in, out) layout for x @ W in the kernel


def init_params(key, dim, hidden_dims, num_layers, n_power_iterations=5):
    assert len(hidden_dims) == 2 and hidden_dims[0] == hidden_dims[1], (
        "synthetic setup stacks per-block weights, so it uses equal hidden dims")
    h = hidden_dims[0]
    W1, B1, W2, B2, W3, B3 = [], [], [], [], [], []
    for layer in range(num_layers):
        k = jax.random.fold_in(key, layer)
        k1, k2, k3 = jax.random.split(k, 3)
        w1, b1 = _init_linear(k1, dim, h, n_power_iterations)
        w2, b2 = _init_linear(k2, h, h, n_power_iterations)
        w3, b3 = _init_linear(k3, h, dim, n_power_iterations)
        W1.append(w1); B1.append(b1)
        W2.append(w2); B2.append(b2)
        W3.append(w3); B3.append(b3)
    stack = lambda xs: jnp.stack(xs, axis=0)
    return dict(
        w1=stack(W1), b1=stack(B1),   # (L, dim, h), (L, h)
        w2=stack(W2), b2=stack(B2),   # (L, h, h),   (L, h)
        w3=stack(W3), b3=stack(B3),   # (L, h, dim), (L, dim)
    )


# ---------------------------------------------------------------------------
# Kernel bodies
# ---------------------------------------------------------------------------
def _iresnet_resident_kernel(x_ref, w1_ref, b1_ref, w2_ref, b2_ref, w3_ref,
                             b3_ref, o_ref, *, num_layers, compute_dtype,
                             unroll):
    """All layers' weights VMEM-resident; layer loop runs inside the body."""
    x = x_ref[...].astype(jnp.float32)                    # (tile_b, dim_p)

    def layer(l, x):
        h = jnp.dot(x.astype(compute_dtype), w1_ref[l],
                    preferred_element_type=jnp.float32) + b1_ref[pl.ds(l, 1), :]
        h = jnp.maximum(h, 0.0)                            # ReLU
        h = jnp.dot(h.astype(compute_dtype), w2_ref[l],
                    preferred_element_type=jnp.float32) + b2_ref[pl.ds(l, 1), :]
        h = jnp.maximum(h, 0.0)                            # ReLU
        r = jnp.dot(h.astype(compute_dtype), w3_ref[l],
                    preferred_element_type=jnp.float32) + b3_ref[pl.ds(l, 1), :]
        return x + r                                       # residual

    if unroll:                                             # static L <= 4
        for l in range(num_layers):
            x = layer(l, x)
    else:                                                  # bounded live ranges
        x = lax.fori_loop(0, num_layers, layer, x)

    o_ref[...] = x.astype(o_ref.dtype)


def _iresnet_stream_kernel(x_ref, w1_ref, b1_ref, w2_ref, b2_ref, w3_ref,
                           b3_ref, o_ref, acc_ref, *, compute_dtype):
    """Weights streamed per layer (grid axis 1); x carried in f32 scratch."""
    l = pl.program_id(1)

    @pl.when(l == 0)
    def _():
        acc_ref[...] = x_ref[...].astype(jnp.float32)

    x = acc_ref[...]
    h = jnp.dot(x.astype(compute_dtype), w1_ref[0],
                preferred_element_type=jnp.float32) + b1_ref[pl.ds(l, 1), :]
    h = jnp.maximum(h, 0.0)
    h = jnp.dot(h.astype(compute_dtype), w2_ref[0],
                preferred_element_type=jnp.float32) + b2_ref[pl.ds(l, 1), :]
    h = jnp.maximum(h, 0.0)
    r = jnp.dot(h.astype(compute_dtype), w3_ref[0],
                preferred_element_type=jnp.float32) + b3_ref[pl.ds(l, 1), :]
    acc_ref[...] = x + r

    @pl.when(l == pl.num_programs(1) - 1)
    def _():
        o_ref[...] = acc_ref[...].astype(o_ref.dtype)


# ---------------------------------------------------------------------------
# pallas_call builders
# ---------------------------------------------------------------------------
def _vmem_limit(needed_bytes):
    return int(min(max(needed_bytes * 13 // 10 + (4 << 20), 32 << 20), 64 << 20))


def _resident_forward(x_p, w1, b1, w2, b2, w3, b3, *, tile_b, compute_dtype,
                      io_alias, flops, bytes_accessed):
    L, dim_p, h_p = w1.shape
    b_p = x_p.shape[0]
    n_bt = b_p // tile_b
    unroll = L <= 4
    w_item = w1.dtype.itemsize

    def build(single_buffer_weights):
        # Grid-invariant operands never need pipelining -> single buffer.
        pm = ({"pipeline_mode": pl.Buffered(buffer_count=1)}
              if single_buffer_weights else {})
        wbuf = 1 if single_buffer_weights else 2
        needed = (wbuf * ((w1.size + w2.size + w3.size) * w_item
                          + (b1.size + b2.size + b3.size) * 4)
                  + 4 * (tile_b * dim_p * 4))               # x + out, 2-buffered
        return pl.pallas_call(
            functools.partial(_iresnet_resident_kernel, num_layers=L,
                              compute_dtype=compute_dtype, unroll=unroll),
            out_shape=jax.ShapeDtypeStruct((b_p, dim_p), x_p.dtype),
            grid_spec=pltpu.PrefetchScalarGridSpec(
                num_scalar_prefetch=0,
                grid=(n_bt,),                                 # batch tiles only
                in_specs=[
                    pl.BlockSpec((tile_b, dim_p), lambda i: (i, 0)),      # x
                    pl.BlockSpec((L, dim_p, h_p), lambda i: (0, 0, 0), **pm),
                    pl.BlockSpec((L, h_p), lambda i: (0, 0), **pm),
                    pl.BlockSpec((L, h_p, h_p), lambda i: (0, 0, 0), **pm),
                    pl.BlockSpec((L, h_p), lambda i: (0, 0), **pm),
                    pl.BlockSpec((L, h_p, dim_p), lambda i: (0, 0, 0), **pm),
                    pl.BlockSpec((L, dim_p), lambda i: (0, 0), **pm),
                ],
                out_specs=pl.BlockSpec((tile_b, dim_p), lambda i: (i, 0)),
            ),
            compiler_params=pltpu.CompilerParams(
                dimension_semantics=("parallel",),
                vmem_limit_bytes=_vmem_limit(needed)),
            input_output_aliases=io_alias,
            cost_estimate=pl.CostEstimate(flops=flops, transcendentals=0,
                                          bytes_accessed=bytes_accessed),
        )(x_p, w1, b1, w2, b2, w3, b3)

    try:
        return build(True)
    except Exception:  # pl.Buffered(1) unsupported on this jax -> default bufs
        return build(False)


def _stream_forward(x_p, w1, b1, w2, b2, w3, b3, *, tile_b, compute_dtype,
                    io_alias, flops, bytes_accessed):
    L, dim_p, h_p = w1.shape
    b_p = x_p.shape[0]
    n_bt = b_p // tile_b
    w_item = w1.dtype.itemsize

    def build(single_buffer_bias):
        pm = ({"pipeline_mode": pl.Buffered(buffer_count=1)}
              if single_buffer_bias else {})
        bbuf = 1 if single_buffer_bias else 2
        needed = (2 * (dim_p * h_p + h_p * h_p + h_p * dim_p) * w_item
                  + bbuf * (b1.size + b2.size + b3.size) * 4
                  + 4 * (tile_b * dim_p * 4)                 # x + out, 2-buffered
                  + tile_b * dim_p * 4)                      # f32 carry scratch
        return pl.pallas_call(
            functools.partial(_iresnet_stream_kernel, compute_dtype=compute_dtype),
            out_shape=jax.ShapeDtypeStruct((b_p, dim_p), x_p.dtype),
            grid_spec=pltpu.PrefetchScalarGridSpec(
                num_scalar_prefetch=0,
                grid=(n_bt, L),                               # layers streamed
                in_specs=[
                    pl.BlockSpec((tile_b, dim_p), lambda i, l: (i, 0)),   # x
                    pl.BlockSpec((1, dim_p, h_p), lambda i, l: (l, 0, 0)),
                    pl.BlockSpec((L, h_p), lambda i, l: (0, 0), **pm),
                    pl.BlockSpec((1, h_p, h_p), lambda i, l: (l, 0, 0)),
                    pl.BlockSpec((L, h_p), lambda i, l: (0, 0), **pm),
                    pl.BlockSpec((1, h_p, dim_p), lambda i, l: (l, 0, 0)),
                    pl.BlockSpec((L, dim_p), lambda i, l: (0, 0), **pm),
                ],
                out_specs=pl.BlockSpec((tile_b, dim_p), lambda i, l: (i, 0)),
                scratch_shapes=[pltpu.VMEM((tile_b, dim_p), jnp.float32)],
            ),
            compiler_params=pltpu.CompilerParams(
                dimension_semantics=("parallel", "arbitrary"),
                vmem_limit_bytes=_vmem_limit(needed)),
            input_output_aliases=io_alias,
            cost_estimate=pl.CostEstimate(flops=flops, transcendentals=0,
                                          bytes_accessed=bytes_accessed),
        )(x_p, w1, b1, w2, b2, w3, b3)

    try:
        return build(True)
    except Exception:
        return build(False)


# ---------------------------------------------------------------------------
# Public wrapper
# ---------------------------------------------------------------------------
def invertible_resnet_forward(x, params, *, max_batch_tile=1024, use_bf16=True,
                              force_stream=False,
                              stream_threshold_bytes=40 << 20):
    B, dim = x.shape
    L = params["w1"].shape[0]
    h = params["w1"].shape[2]

    # Lane-dense feature dims (last dim -> 128 lanes), sublane-aligned batch.
    dim_p = _round_up(dim, 128)
    h_p = _round_up(h, 128)

    if B <= 8:
        tile_b = _round_up(max(B, 1), 8)
    else:
        # >= 2 grid steps so the "parallel" batch axis can shard across v7x's
        # two TensorCores; tile capped at max_batch_tile (large M amortizes
        # the ~600-cycle per-grid-step overhead on v5e/v6e).
        tile_b = min(_round_up(max_batch_tile, 8), _round_up((B + 1) // 2, 8))
    b_p = _round_up(B, tile_b)

    compute_dtype = jnp.bfloat16 if use_bf16 else jnp.float32

    # Zero-padding is pure layout plumbing: padded rows/cols of W and b are
    # zero, ReLU(0) == 0 and final_activation is None, so padded output
    # columns stay exactly zero and are sliced off at the end.
    x_p = jnp.pad(x, ((0, b_p - B), (0, dim_p - dim)))
    w1 = jnp.pad(params["w1"], ((0, 0), (0, dim_p - dim), (0, h_p - h))).astype(compute_dtype)
    w2 = jnp.pad(params["w2"], ((0, 0), (0, h_p - h), (0, h_p - h))).astype(compute_dtype)
    w3 = jnp.pad(params["w3"], ((0, 0), (0, h_p - h), (0, dim_p - dim))).astype(compute_dtype)
    b1 = jnp.pad(params["b1"], ((0, 0), (0, h_p - h)))          # f32 (L, h_p)
    b2 = jnp.pad(params["b2"], ((0, 0), (0, h_p - h)))          # f32 (L, h_p)
    b3 = jnp.pad(params["b3"], ((0, 0), (0, dim_p - dim)))      # f32 (L, dim_p)

    w_item = w1.dtype.itemsize
    resident_bytes = ((w1.size + w2.size + w3.size) * w_item
                      + (b1.size + b2.size + b3.size) * 4)
    stream = force_stream or resident_bytes > stream_threshold_bytes

    # Alias the freshly padded x buffer with the output; skip when no padding
    # was applied (x_p could then be the caller's own buffer).
    io_alias = {0: 0} if (b_p != B or dim_p != dim) else {}

    flops = 2 * b_p * L * (dim_p * h_p + h_p * h_p + h_p * dim_p)
    bytes_accessed = (2 * b_p * dim_p * 4
                      + (w1.size + w2.size + w3.size) * w_item
                      + (b1.size + b2.size + b3.size) * 4)

    common = dict(tile_b=tile_b, compute_dtype=compute_dtype, io_alias=io_alias,
                  flops=flops, bytes_accessed=bytes_accessed)
    if stream:
        out_p = _stream_forward(x_p, w1, b1, w2, b2, w3, b3, **common)
    else:
        out_p = _resident_forward(x_p, w1, b1, w2, b2, w3, b3, **common)
    return out_p[:B, :dim]


# ---------------------------------------------------------------------------
# Pure-JAX reference (correctness check only)
# ---------------------------------------------------------------------------
def reference_forward(x, params):
    L = params["w1"].shape[0]
    for l in range(L):
        h = jnp.maximum(x @ params["w1"][l] + params["b1"][l], 0.0)
        h = jnp.maximum(h @ params["w2"][l] + params["b2"][l], 0.0)
        x = x + (h @ params["w3"][l] + params["b3"][l])
    return x


if __name__ == "__main__":
    # Small shapes consistent with the module: dim=16, hidden_dims=[32, 32],
    # num_layers=2, batch=8, activation='ReLU', final_activation=None,
    # n_power_iterations=5.
    dim, hidden_dims, num_layers = 16, [32, 32], 2
    batch = 8

    key = jax.random.PRNGKey(0)
    kx, kp = jax.random.split(key)
    x = jax.random.normal(kx, (batch, dim), dtype=jnp.float32)
    params = init_params(kp, dim, hidden_dims, num_layers, n_power_iterations=5)

    ref = np.asarray(reference_forward(x, params))

    # Main path: all layers resident, bf16 MXU operands, f32 accumulation.
    out = jax.block_until_ready(invertible_resnet_forward(x, params))
    np.testing.assert_allclose(np.asarray(out), ref, rtol=2e-2, atol=2e-2)

    # f32 path kept as the tight-tolerance reference path.
    out_f32 = jax.block_until_ready(
        invertible_resnet_forward(x, params, use_bf16=False))
    np.testing.assert_allclose(np.asarray(out_f32), ref, rtol=1e-5, atol=1e-5)

    # Weight-streaming fallback path (used automatically when resident weights
    # would exceed ~40 MiB of VMEM) — forced here to validate it.
    out_stream = jax.block_until_ready(
        invertible_resnet_forward(x, params, force_stream=True))
    np.testing.assert_allclose(np.asarray(out_stream), ref, rtol=2e-2, atol=2e-2)

    print("KERNEL_OK")
</pallas_src>

<mosaic_0001>
module attributes {stable_mosaic.version = 11 : i64} {
  func.func @_iresnet_resident_kernel(%arg0: i32, %arg1: memref<8x128xf32, #tpu.memory_space<vmem>>, %arg2: memref<2x128x128xbf16, #tpu.memory_space<vmem>>, %arg3: memref<2x128xf32, #tpu.memory_space<vmem>>, %arg4: memref<2x128x128xbf16, #tpu.memory_space<vmem>>, %arg5: memref<2x128xf32, #tpu.memory_space<vmem>>, %arg6: memref<2x128x128xbf16, #tpu.memory_space<vmem>>, %arg7: memref<2x128xf32, #tpu.memory_space<vmem>>, %arg8: memref<8x128xf32, #tpu.memory_space<vmem>>) attributes {dimension_semantics = [#tpu.dimension_semantics<parallel>], iteration_bounds = array<i64: 1>, scalar_prefetch = 0 : i64, scratch_operands = 0 : i64, tpu.core_type = #tpu.core_type<tc>, window_params = [{transform_indices = @transform_0, window_bounds = array<i64: 8, 128>}, {pipeline_mode = #tpu.pipeline_mode<synchronous>, transform_indices = @transform_1, window_bounds = array<i64: 2, 128, 128>}, {pipeline_mode = #tpu.pipeline_mode<synchronous>, transform_indices = @transform_2, window_bounds = array<i64: 2, 128>}, {pipeline_mode = #tpu.pipeline_mode<synchronous>, transform_indices = @transform_3, window_bounds = array<i64: 2, 128, 128>}, {pipeline_mode = #tpu.pipeline_mode<synchronous>, transform_indices = @transform_4, window_bounds = array<i64: 2, 128>}, {pipeline_mode = #tpu.pipeline_mode<synchronous>, transform_indices = @transform_5, window_bounds = array<i64: 2, 128, 128>}, {pipeline_mode = #tpu.pipeline_mode<synchronous>, transform_indices = @transform_6, window_bounds = array<i64: 2, 128>}, {transform_indices = @transform_7, window_bounds = array<i64: 8, 128>}]} {
    %c0 = arith.constant 0 : index
    %c0_0 = arith.constant 0 : index
    %0 = vector.load %arg1[%c0, %c0_0] : memref<8x128xf32, #tpu.memory_space<vmem>>, vector<8x128xf32>
    %1 = arith.truncf %0 : vector<8x128xf32> to vector<8x128xbf16>
    %c0_1 = arith.constant 0 : index
    %c0_2 = arith.constant 0 : index
    %c0_3 = arith.constant 0 : index
    %2 = vector.load %arg2[%c0_1, %c0_2, %c0_3] : memref<2x128x128xbf16, #tpu.memory_space<vmem>>, vector<1x128x128xbf16>
    %3 = vector.shape_cast %2 : vector<1x128x128xbf16> to vector<128x128xbf16>
    %cst = arith.constant dense<0.000000e+00> : vector<8x128xf32>
    %4 = tpu.matmul %1, %3, %cst {dimension_numbers = #tpu.dot_dimension_numbers<[1], [0], [0], [1], [0, 0, 1, 1], [], []>} : vector<8x128xbf16>, vector<128x128xbf16>, vector<8x128xf32> -> vector<8x128xf32>
    %c0_4 = arith.constant 0 : index
    %c0_5 = arith.constant 0 : index
    %5 = vector.load %arg3[%c0_4, %c0_5] : memref<2x128xf32, #tpu.memory_space<vmem>>, vector<1x128xf32>
    %6 = vector.broadcast %5 : vector<1x128xf32> to vector<8x128xf32>
    %7 = arith.addf %4, %6 : vector<8x128xf32>
    %cst_6 = arith.constant 0.000000e+00 : f32
    %8 = vector.broadcast %cst_6 : f32 to vector<8x128xf32>
    %9 = arith.maximumf %7, %8 : vector<8x128xf32>
    %10 = arith.truncf %9 : vector<8x128xf32> to vector<8x128xbf16>
    %c0_7 = arith.constant 0 : index
    %c0_8 = arith.constant 0 : index
    %c0_9 = arith.constant 0 : index
    %11 = vector.load %arg4[%c0_7, %c0_8, %c0_9] : memref<2x128x128xbf16, #tpu.memory_space<vmem>>, vector<1x128x128xbf16>
    %12 = vector.shape_cast %11 : vector<1x128x128xbf16> to vector<128x128xbf16>
    %cst_10 = arith.constant dense<0.000000e+00> : vector<8x128xf32>
    %13 = tpu.matmul %10, %12, %cst_10 {dimension_numbers = #tpu.dot_dimension_numbers<[1], [0], [0], [1], [0, 0, 1, 1], [], []>} : vector<8x128xbf16>, vector<128x128xbf16>, vector<8x128xf32> -> vector<8x128xf32>
    %c0_11 = arith.constant 0 : index
    %c0_12 = arith.constant 0 : index
    %14 = vector.load %arg5[%c0_11, %c0_12] : memref<2x128xf32, #tpu.memory_space<vmem>>, vector<1x128xf32>
    %15 = vector.broadcast %14 : vector<1x128xf32> to vector<8x128xf32>
    %16 = arith.addf %13, %15 : vector<8x128xf32>
    %cst_13 = arith.constant 0.000000e+00 : f32
    %17 = vector.broadcast %cst_13 : f32 to vector<8x128xf32>
    %18 = arith.maximumf %16, %17 : vector<8x128xf32>
    %19 = arith.truncf %18 : vector<8x128xf32> to vector<8x128xbf16>
    %c0_14 = arith.constant 0 : index
    %c0_15 = arith.constant 0 : index
    %c0_16 = arith.constant 0 : index
    %20 = vector.load %arg6[%c0_14, %c0_15, %c0_16] : memref<2x128x128xbf16, #tpu.memory_space<vmem>>, vector<1x128x128xbf16>
    %21 = vector.shape_cast %20 : vector<1x128x128xbf16> to vector<128x128xbf16>
    %cst_17 = arith.constant dense<0.000000e+00> : vector<8x128xf32>
    %22 = tpu.matmul %19, %21, %cst_17 {dimension_numbers = #tpu.dot_dimension_numbers<[1], [0], [0], [1], [0, 0, 1, 1], [], []>} : vector<8x128xbf16>, vector<128x128xbf16>, vector<8x128xf32> -> vector<8x128xf32>
    %c0_18 = arith.constant 0 : index
    %c0_19 = arith.constant 0 : index
    %23 = vector.load %arg7[%c0_18, %c0_19] : memref<2x128xf32, #tpu.memory_space<vmem>>, vector<1x128xf32>
    %24 = vector.broadcast %23 : vector<1x128xf32> to vector<8x128xf32>
    %25 = arith.addf %22, %24 : vector<8x128xf32>
    %26 = arith.addf %0, %25 : vector<8x128xf32>
    %27 = arith.truncf %26 : vector<8x128xf32> to vector<8x128xbf16>
    %c1 = arith.constant 1 : index
    %c0_20 = arith.constant 0 : index
    %c0_21 = arith.constant 0 : index
    %28 = vector.load %arg2[%c1, %c0_20, %c0_21] : memref<2x128x128xbf16, #tpu.memory_space<vmem>>, vector<1x128x128xbf16>
    %29 = vector.shape_cast %28 : vector<1x128x128xbf16> to vector<128x128xbf16>
    %cst_22 = arith.constant dense<0.000000e+00> : vector<8x128xf32>
    %30 = tpu.matmul %27, %29, %cst_22 {dimension_numbers = #tpu.dot_dimension_numbers<[1], [0], [0], [1], [0, 0, 1, 1], [], []>} : vector<8x128xbf16>, vector<128x128xbf16>, vector<8x128xf32> -> vector<8x128xf32>
    %c1_23 = arith.constant 1 : index
    %c0_24 = arith.constant 0 : index
    %31 = vector.load %arg3[%c1_23, %c0_24] : memref<2x128xf32, #tpu.memory_space<vmem>>, vector<1x128xf32>
    %32 = vector.broadcast %31 : vector<1x128xf32> to vector<8x128xf32>
    %33 = arith.addf %30, %32 : vector<8x128xf32>
    %cst_25 = arith.constant 0.000000e+00 : f32
    %34 = vector.broadcast %cst_25 : f32 to vector<8x128xf32>
    %35 = arith.maximumf %33, %34 : vector<8x128xf32>
    %36 = arith.truncf %35 : vector<8x128xf32> to vector<8x128xbf16>
    %c1_26 = arith.constant 1 : index
    %c0_27 = arith.constant 0 : index
    %c0_28 = arith.constant 0 : index
    %37 = vector.load %arg4[%c1_26, %c0_27, %c0_28] : memref<2x128x128xbf16, #tpu.memory_space<vmem>>, vector<1x128x128xbf16>
    %38 = vector.shape_cast %37 : vector<1x128x128xbf16> to vector<128x128xbf16>
    %cst_29 = arith.constant dense<0.000000e+00> : vector<8x128xf32>
    %39 = tpu.matmul %36, %38, %cst_29 {dimension_numbers = #tpu.dot_dimension_numbers<[1], [0], [0], [1], [0, 0, 1, 1], [], []>} : vector<8x128xbf16>, vector<128x128xbf16>, vector<8x128xf32> -> vector<8x128xf32>
    %c1_30 = arith.constant 1 : index
    %c0_31 = arith.constant 0 : index
    %40 = vector.load %arg5[%c1_30, %c0_31] : memref<2x128xf32, #tpu.memory_space<vmem>>, vector<1x128xf32>
    %41 = vector.broadcast %40 : vector<1x128xf32> to vector<8x128xf32>
    %42 = arith.addf %39, %41 : vector<8x128xf32>
    %cst_32 = arith.constant 0.000000e+00 : f32
    %43 = vector.broadcast %cst_32 : f32 to vector<8x128xf32>
    %44 = arith.maximumf %42, %43 : vector<8x128xf32>
    %45 = arith.truncf %44 : vector<8x128xf32> to vector<8x128xbf16>
    %c1_33 = arith.constant 1 : index
    %c0_34 = arith.constant 0 : index
    %c0_35 = arith.constant 0 : index
    %46 = vector.load %arg6[%c1_33, %c0_34, %c0_35] : memref<2x128x128xbf16, #tpu.memory_space<vmem>>, vector<1x128x128xbf16>
    %47 = vector.shape_cast %46 : vector<1x128x128xbf16> to vector<128x128xbf16>
    %cst_36 = arith.constant dense<0.000000e+00> : vector<8x128xf32>
    %48 = tpu.matmul %45, %47, %cst_36 {dimension_numbers = #tpu.dot_dimension_numbers<[1], [0], [0], [1], [0, 0, 1, 1], [], []>} : vector<8x128xbf16>, vector<128x128xbf16>, vector<8x128xf32> -> vector<8x128xf32>
    %c1_37 = arith.constant 1 : index
    %c0_38 = arith.constant 0 : index
    %49 = vector.load %arg7[%c1_37, %c0_38] : memref<2x128xf32, #tpu.memory_space<vmem>>, vector<1x128xf32>
    %50 = vector.broadcast %49 : vector<1x128xf32> to vector<8x128xf32>
    %51 = arith.addf %48, %50 : vector<8x128xf32>
    %52 = arith.addf %26, %51 : vector<8x128xf32>
    %c0_39 = arith.constant 0 : index
    %c0_40 = arith.constant 0 : index
    %53 = vector.load %arg8[%c0_39, %c0_40] : memref<8x128xf32, #tpu.memory_space<vmem>>, vector<8x128xf32>
    tpu.vector_store %arg8[%c0_39, %c0_40], %52 {strides = array<i32>} : memref<8x128xf32, #tpu.memory_space<vmem>>, vector<8x128xf32>,
    return
  }
  func.func @transform_0(%arg0: i32) -> (i32, i32) {
    %c0_i32 = arith.constant 0 : i32
    %c0_i32_0 = arith.constant 0 : i32
    return %arg0, %c0_i32 : i32, i32
  }
  func.func @transform_1(%arg0: i32) -> (i32, i32, i32) {
    %c0_i32 = arith.constant 0 : i32
    %c0_i32_0 = arith.constant 0 : i32
    %c0_i32_1 = arith.constant 0 : i32
    %c0_i32_2 = arith.constant 0 : i32
    return %c0_i32, %c0_i32_0, %c0_i32_1 : i32, i32, i32
  }
  func.func @transform_2(%arg0: i32) -> (i32, i32) {
    %c0_i32 = arith.constant 0 : i32
    %c0_i32_0 = arith.constant 0 : i32
    %c0_i32_1 = arith.constant 0 : i32
    return %c0_i32, %c0_i32_0 : i32, i32
  }
  func.func @transform_3(%arg0: i32) -> (i32, i32, i32) {
    %c0_i32 = arith.constant 0 : i32
    %c0_i32_0 = arith.constant 0 : i32
    %c0_i32_1 = arith.constant 0 : i32
    %c0_i32_2 = arith.constant 0 : i32
    return %c0_i32, %c0_i32_0, %c0_i32_1 : i32, i32, i32
  }
  func.func @transform_4(%arg0: i32) -> (i32, i32) {
    %c0_i32 = arith.constant 0 : i32
    %c0_i32_0 = arith.constant 0 : i32
    %c0_i32_1 = arith.constant 0 : i32
    return %c0_i32, %c0_i32_0 : i32, i32
  }
  func.func @transform_5(%arg0: i32) -> (i32, i32, i32) {
    %c0_i32 = arith.constant 0 : i32
    %c0_i32_0 = arith.constant 0 : i32
    %c0_i32_1 = arith.constant 0 : i32
    %c0_i32_2 = arith.constant 0 : i32
    return %c0_i32, %c0_i32_0, %c0_i32_1 : i32, i32, i32
  }
  func.func @transform_6(%arg0: i32) -> (i32, i32) {
    %c0_i32 = arith.constant 0 : i32
    %c0_i32_0 = arith.constant 0 : i32
    %c0_i32_1 = arith.constant 0 : i32
    return %c0_i32, %c0_i32_0 : i32, i32
  }
  func.func @transform_7(%arg0: i32) -> (i32, i32) {
    %c0_i32 = arith.constant 0 : i32
    %c0_i32_0 = arith.constant 0 : i32
    return %arg0, %c0_i32 : i32, i32
  }
}

module attributes {stable_mosaic.version = 11 : i64} {
  func.func @_iresnet_resident_kernel(%arg0: i32, %arg1: memref<8x128xf32, #tpu.memory_space<vmem>>, %arg2: memref<2x128x128xbf16, #tpu.memory_space<vmem>>, %arg3: memref<2x128xf32, #tpu.memory_space<vmem>>, %arg4: memref<2x128x128xbf16, #tpu.memory_space<vmem>>, %arg5: memref<2x128xf32, #tpu.memory_space<vmem>>, %arg6: memref<2x128x128xbf16, #tpu.memory_space<vmem>>, %arg7: memref<2x128xf32, #tpu.memory_space<vmem>>, %arg8: memref<8x128xf32, #tpu.memory_space<vmem>>) attributes {dimension_semantics = [#tpu.dimension_semantics<parallel>], iteration_bounds = array<i64: 1>, scalar_prefetch = 0 : i64, scratch_operands = 0 : i64, tpu.core_type = #tpu.core_type<tc>, window_params = [{transform_indices = @transform_0, window_bounds = array<i64: 8, 128>}, {pipeline_mode = #tpu.pipeline_mode<synchronous>, transform_indices = @transform_1, window_bounds = array<i64: 2, 128, 128>}, {pipeline_mode = #tpu.pipeline_mode<synchronous>, transform_indices = @transform_2, window_bounds = array<i64: 2, 128>}, {pipeline_mode = #tpu.pipeline_mode<synchronous>, transform_indices = @transform_3, window_bounds = array<i64: 2, 128, 128>}, {pipeline_mode = #tpu.pipeline_mode<synchronous>, transform_indices = @transform_4, window_bounds = array<i64: 2, 128>}, {pipeline_mode = #tpu.pipeline_mode<synchronous>, transform_indices = @transform_5, window_bounds = array<i64: 2, 128, 128>}, {pipeline_mode = #tpu.pipeline_mode<synchronous>, transform_indices = @transform_6, window_bounds = array<i64: 2, 128>}, {transform_indices = @transform_7, window_bounds = array<i64: 8, 128>}]} {
    %c0 = arith.constant 0 : index
    %c0_0 = arith.constant 0 : index
    %0 = vector.load %arg1[%c0, %c0_0] : memref<8x128xf32, #tpu.memory_space<vmem>>, vector<8x128xf32>
    %1 = arith.truncf %0 : vector<8x128xf32> to vector<8x128xbf16>
    %c0_1 = arith.constant 0 : index
    %c0_2 = arith.constant 0 : index
    %c0_3 = arith.constant 0 : index
    %2 = vector.load %arg2[%c0_1, %c0_2, %c0_3] : memref<2x128x128xbf16, #tpu.memory_space<vmem>>, vector<1x128x128xbf16>
    %3 = vector.shape_cast %2 : vector<1x128x128xbf16> to vector<128x128xbf16>
    %cst = arith.constant dense<0.000000e+00> : vector<8x128xf32>
    %4 = tpu.matmul %1, %3, %cst {dimension_numbers = #tpu.dot_dimension_numbers<[1], [0], [0], [1], [0, 0, 1, 1], [], []>} : vector<8x128xbf16>, vector<128x128xbf16>, vector<8x128xf32> -> vector<8x128xf32>
    %c0_4 = arith.constant 0 : index
    %c0_5 = arith.constant 0 : index
    %5 = vector.load %arg3[%c0_4, %c0_5] : memref<2x128xf32, #tpu.memory_space<vmem>>, vector<1x128xf32>
    %6 = vector.broadcast %5 : vector<1x128xf32> to vector<8x128xf32>
    %7 = arith.addf %4, %6 : vector<8x128xf32>
    %cst_6 = arith.constant 0.000000e+00 : f32
    %8 = vector.broadcast %cst_6 : f32 to vector<8x128xf32>
    %9 = arith.maximumf %7, %8 : vector<8x128xf32>
    %10 = arith.truncf %9 : vector<8x128xf32> to vector<8x128xbf16>
    %c0_7 = arith.constant 0 : index
    %c0_8 = arith.constant 0 : index
    %c0_9 = arith.constant 0 : index
    %11 = vector.load %arg4[%c0_7, %c0_8, %c0_9] : memref<2x128x128xbf16, #tpu.memory_space<vmem>>, vector<1x128x128xbf16>
    %12 = vector.shape_cast %11 : vector<1x128x128xbf16> to vector<128x128xbf16>
    %cst_10 = arith.constant dense<0.000000e+00> : vector<8x128xf32>
    %13 = tpu.matmul %10, %12, %cst_10 {dimension_numbers = #tpu.dot_dimension_numbers<[1], [0], [0], [1], [0, 0, 1, 1], [], []>} : vector<8x128xbf16>, vector<128x128xbf16>, vector<8x128xf32> -> vector<8x128xf32>
    %c0_11 = arith.constant 0 : index
    %c0_12 = arith.constant 0 : index
    %14 = vector.load %arg5[%c0_11, %c0_12] : memref<2x128xf32, #tpu.memory_space<vmem>>, vector<1x128xf32>
    %15 = vector.broadcast %14 : vector<1x128xf32> to vector<8x128xf32>
    %16 = arith.addf %13, %15 : vector<8x128xf32>
    %cst_13 = arith.constant 0.000000e+00 : f32
    %17 = vector.broadcast %cst_13 : f32 to vector<8x128xf32>
    %18 = arith.maximumf %16, %17 : vector<8x128xf32>
    %19 = arith.truncf %18 : vector<8x128xf32> to vector<8x128xbf16>
    %c0_14 = arith.constant 0 : index
    %c0_15 = arith.constant 0 : index
    %c0_16 = arith.constant 0 : index
    %20 = vector.load %arg6[%c0_14, %c0_15, %c0_16] : memref<2x128x128xbf16, #tpu.memory_space<vmem>>, vector<1x128x128xbf16>
    %21 = vector.shape_cast %20 : vector<1x128x128xbf16> to vector<128x128xbf16>
    %cst_17 = arith.constant dense<0.000000e+00> : vector<8x128xf32>
    %22 = tpu.matmul %19, %21, %cst_17 {dimension_numbers = #tpu.dot_dimension_numbers<[1], [0], [0], [1], [0, 0, 1, 1], [], []>} : vector<8x128xbf16>, vector<128x128xbf16>, vector<8x128xf32> -> vector<8x128xf32>
    %c0_18 = arith.constant 0 : index
    %c0_19 = arith.constant 0 : index
    %23 = vector.load %arg7[%c0_18, %c0_19] : memref<2x128xf32, #tpu.memory_space<vmem>>, vector<1x128xf32>
    %24 = vector.broadcast %23 : vector<1x128xf32> to vector<8x128xf32>
    %25 = arith.addf %22, %24 : vector<8x128xf32>
    %26 = arith.addf %0, %25 : vector<8x128xf32>
    %27 = arith.truncf %26 : vector<8x128xf32> to vector<8x128xbf16>
    %c1 = arith.constant 1 : index
    %c0_20 = arith.constant 0 : index
    %c0_21 = arith.constant 0 : index
    %28 = vector.load %arg2[%c1, %c0_20, %c0_21] : memref<2x128x128xbf16, #tpu.memory_space<vmem>>, vector<1x128x128xbf16>
    %29 = vector.shape_cast %28 : vector<1x128x128xbf16> to vector<128x128xbf16>
    %cst_22 = arith.constant dense<0.000000e+00> : vector<8x128xf32>
    %30 = tpu.matmul %27, %29, %cst_22 {dimension_numbers = #tpu.dot_dimension_numbers<[1], [0], [0], [1], [0, 0, 1, 1], [], []>} : vector<8x128xbf16>, vector<128x128xbf16>, vector<8x128xf32> -> vector<8x128xf32>
    %c1_23 = arith.constant 1 : index
    %c0_24 = arith.constant 0 : index
    %31 = vector.load %arg3[%c1_23, %c0_24] : memref<2x128xf32, #tpu.memory_space<vmem>>, vector<1x128xf32>
    %32 = vector.broadcast %31 : vector<1x128xf32> to vector<8x128xf32>
    %33 = arith.addf %30, %32 : vector<8x128xf32>
    %cst_25 = arith.constant 0.000000e+00 : f32
    %34 = vector.broadcast %cst_25 : f32 to vector<8x128xf32>
    %35 = arith.maximumf %33, %34 : vector<8x128xf32>
    %36 = arith.truncf %35 : vector<8x128xf32> to vector<8x128xbf16>
    %c1_26 = arith.constant 1 : index
    %c0_27 = arith.constant 0 : index
    %c0_28 = arith.constant 0 : index
    %37 = vector.load %arg4[%c1_26, %c0_27, %c0_28] : memref<2x128x128xbf16, #tpu.memory_space<vmem>>, vector<1x128x128xbf16>
    %38 = vector.shape_cast %37 : vector<1x128x128xbf16> to vector<128x128xbf16>
    %cst_29 = arith.constant dense<0.000000e+00> : vector<8x128xf32>
    %39 = tpu.matmul %36, %38, %cst_29 {dimension_numbers = #tpu.dot_dimension_numbers<[1], [0], [0], [1], [0, 0, 1, 1], [], []>} : vector<8x128xbf16>, vector<128x128xbf16>, vector<8x128xf32> -> vector<8x128xf32>
    %c1_30 = arith.constant 1 : index
    %c0_31 = arith.constant 0 : index
    %40 = vector.load %arg5[%c1_30, %c0_31] : memref<2x128xf32, #tpu.memory_space<vmem>>, vector<1x128xf32>
    %41 = vector.broadcast %40 : vector<1x128xf32> to vector<8x128xf32>
    %42 = arith.addf %39, %41 : vector<8x128xf32>
    %cst_32 = arith.constant 0.000000e+00 : f32
    %43 = vector.broadcast %cst_32 : f32 to vector<8x128xf32>
    %44 = arith.maximumf %42, %43 : vector<8x128xf32>
    %45 = arith.truncf %44 : vector<8x128xf32> to vector<8x128xbf16>
    %c1_33 = arith.constant 1 : index
    %c0_34 = arith.constant 0 : index
    %c0_35 = arith.constant 0 : index
    %46 = vector.load %arg6[%c1_33, %c0_34, %c0_35] : memref<2x128x128xbf16, #tpu.memory_space<vmem>>, vector<1x128x128xbf16>
    %47 = vector.shape_cast %46 : vector<1x128x128xbf16> to vector<128x128xbf16>
    %cst_36 = arith.constant dense<0.000000e+00> : vector<8x128xf32>
    %48 = tpu.matmul %45, %47, %cst_36 {dimension_numbers = #tpu.dot_dimension_numbers<[1], [0], [0], [1], [0, 0, 1, 1], [], []>} : vector<8x128xbf16>, vector<128x128xbf16>, vector<8x128xf32> -> vector<8x128xf32>
    %c1_37 = arith.constant 1 : index
    %c0_38 = arith.constant 0 : index
    %49 = vector.load %arg7[%c1_37, %c0_38] : memref<2x128xf32, #tpu.memory_space<vmem>>, vector<1x128xf32>
    %50 = vector.broadcast %49 : vector<1x128xf32> to vector<8x128xf32>
    %51 = arith.addf %48, %50 : vector<8x128xf32>
    %52 = arith.addf %26, %51 : vector<8x128xf32>
    %c0_39 = arith.constant 0 : index
    %c0_40 = arith.constant 0 : index
    %53 = vector.load %arg8[%c0_39, %c0_40] : memref<8x128xf32, #tpu.memory_space<vmem>>, vector<8x128xf32>
    tpu.vector_store %arg8[%c0_39, %c0_40], %52 {strides = array<i32>} : memref<8x128xf32, #tpu.memory_space<vmem>>, vector<8x128xf32>,
    return
  }
  func.func @transform_0(%arg0: i32) -> (i32, i32) {
    %c0_i32 = arith.constant 0 : i32
    %c0_i32_0 = arith.constant 0 : i32
    return %arg0, %c0_i32 : i32, i32
  }
  func.func @transform_1(%arg0: i32) -> (i32, i32, i32) {
    %c0_i32 = arith.constant 0 : i32
    %c0_i32_0 = arith.constant 0 : i32
    %c0_i32_1 = arith.constant 0 : i32
    %c0_i32_2 = arith.constant 0 : i32
    return %c0_i32, %c0_i32_0, %c0_i32_1 : i32, i32, i32
  }
  func.func @transform_2(%arg0: i32) -> (i32, i32) {
    %c0_i32 = arith.constant 0 : i32
    %c0_i32_0 = arith.constant 0 : i32
    %c0_i32_1 = arith.constant 0 : i32
    return %c0_i32, %c0_i32_0 : i32, i32
  }
  func.func @transform_3(%arg0: i32) -> (i32, i32, i32) {
    %c0_i32 = arith.constant 0 : i32
    %c0_i32_0 = arith.constant 0 : i32
    %c0_i32_1 = arith.constant 0 : i32
    %c0_i32_2 = arith.constant 0 : i32
    return %c0_i32, %c0_i32_0, %c0_i32_1 : i32, i32, i32
  }
  func.func @transform_4(%arg0: i32) -> (i32, i32) {
    %c0_i32 = arith.constant 0 : i32
    %c0_i32_0 = arith.constant 0 : i32
    %c0_i32_1 = arith.constant 0 : i32
    return %c0_i32, %c0_i32_0 : i32, i32
  }
  func.func @transform_5(%arg0: i32) -> (i32, i32, i32) {
    %c0_i32 = arith.constant 0 : i32
    %c0_i32_0 = arith.constant 0 : i32
    %c0_i32_1 = arith.constant 0 : i32
    %c0_i32_2 = arith.constant 0 : i32
    return %c0_i32, %c0_i32_0, %c0_i32_1 : i32, i32, i32
  }
  func.func @transform_6(%arg0: i32) -> (i32, i32) {
    %c0_i32 = arith.constant 0 : i32
    %c0_i32_0 = arith.constant 0 : i32
    %c0_i32_1 = arith.constant 0 : i32
    return %c0_i32, %c0_i32_0 : i32, i32
  }
  func.func @transform_7(%arg0: i32) -> (i32, i32) {
    %c0_i32 = arith.constant 0 : i32
    %c0_i32_0 = arith.constant 0 : i32
    return %arg0, %c0_i32 : i32, i32
  }
}

</mosaic_0001>

<bundles_post_ra>
// kernel: tpu_custom_call.1
= control target key start
LH: loop header
LB: loop body
LE: loop exit
PB: predicated region body
PF: predicated region fallthrough
CT: control target
= control target key end

     0   :  { %12 = vsyncpa [#allocation3], 0  ;;  %s1373_s0 = inlined_call_operand.hbm [shape: f32[8,128], index: 0, kind: input, shape index: {}, may-alias: {0,7}]   ;;  %s1374_s1 = inlined_call_operand.hbm [shape: bf16[2,128,128], index: 1, kind: input, shape index: {}]   ;;  %s1375_s2 = inlined_call_operand.vmem [shape: f32[2,128], index: 2, kind: input, shape index: {}]   ;;  %s1376_s3 = inlined_call_operand.hbm [shape: bf16[2,128,128], index: 3, kind: input, shape index: {}]   ;;  %s1377_s4 = inlined_call_operand.vmem [shape: f32[2,128], index: 4, kind: input, shape index: {}]   ;;  %s1378_s5 = inlined_call_operand.hbm [shape: bf16[2,128,128], index: 5, kind: input, shape index: {}]   ;;  %s1379_s6 = inlined_call_operand.vmem [shape: f32[2,128], index: 6, kind: input, shape index: {}]   ;;  %s1380_s7 = inlined_call_operand.hbm [shape: f32[8,128], index: 7, kind: output, shape index: {}, may-alias: {0,7}]  }
   0x1   :  { %13 = vsyncpa [#allocation6], 0 }
   0x2   :  { %14 = vsyncpa [#allocation9], 0 }
   0x3   :  { %15 = vsyncpa [#allocation4], 0  ;;  %s1172_s24 = smov [#allocation5]   ;;  %s1054_s28 = scalar_lea.hbm %s1374_s1, 2048 }
   0x4   :  { %s31_s25 = sshll.u32 %s1172_s24, 4  ;;  %p1055_p0 = scmp.ne.s32.totalorder %s1374_s1, %s1054_s28  ;;  %s32_s25 = int_to_ptr.vmem [resolvable:$true] %s31_s25 }
   0x5   :  { %p1058_p1 = scmp.lt.u32.totalorder %s1054_s28, %s1374_s1 }
   0x7   :  { %p1060_p2 = pnand %p1058_p1, %p1055_p0 }
   0x9   :  { %1063 = shalt.err (!%p1060_p2)
}
   0xa   :  { %s1064_s10 = scalar_lea.vmem %s32_s25, 2048  ;;  %p1069_p4 = scmp.lt.s32.totalorder %s32_s25, %s32_s25 }
   0xb   :  { %p1065_p3 = scmp.ne.s32.totalorder %s32_s25, %s1064_s10  ;;  %p1070_p5 = scmp.lt.s32.totalorder %s1064_s10, %s1064_s10 }
   0xd   :  { %p1071_p6 = por %p1070_p5, %p1069_p4 }
   0xf   :  { %p1072_p7 = pnand %p1071_p6, %p1065_p3 }
  0x11   :  { %1075 = shalt.err (!%p1072_p7)
}
  0x12   :  { %s1173_s11 = smov 64   ;;  %s1174_s12 = smov 4  }
  0x13   :  { %37 = dma.hbm_to_vmem [thread:$0]  %s1374_s1, 2048, %s32_s25, [#allocation6], %s1173_s11, %s1173_s11, %s1174_s12  }
  0x14   :  { %s1175_s15 = smov [#allocation2]   ;;  %s1176_s17 = smov [#allocation7]  }
  0x15   :  { %s22_s16 = sshll.u32 %s1175_s15, 4  ;;  %s45_s18 = sshll.u32 %s1176_s17, 4  ;;  %s23_s16 = int_to_ptr.vmem [resolvable:$true] %s22_s16  ;;  %s46_s18 = int_to_ptr.vmem [resolvable:$true] %s45_s18 }
  0x16   :  { %s1076_s21 = scalar_lea.hbm %s1373_s0, 128 }
  0x17   :  { %p1077_p8 = scmp.ne.s32.totalorder %s1373_s0, %s1076_s21  ;;  %p1080_p9 = scmp.lt.u32.totalorder %s1076_s21, %s1373_s0 }
  0x19   :  { %p1082_p10 = pnand %p1080_p9, %p1077_p8 }
  0x1b   :  { %1085 = shalt.err (!%p1082_p10)
}
  0x1c   :  { %s1086_s1 = scalar_lea.vmem %s23_s16, 128  ;;  %p1091_p12 = scmp.lt.s32.totalorder %s23_s16, %s23_s16 }
  0x1d   :  { %p1087_p11 = scmp.ne.s32.totalorder %s23_s16, %s1086_s1  ;;  %p1092_p13 = scmp.lt.s32.totalorder %s1086_s1, %s1086_s1 }
  0x1f   :  { %p1093_p0 = por %p1092_p13, %p1091_p12 }
  0x21   :  { %p1094_p1 = pnand %p1093_p0, %p1087_p11 }
  0x23   :  { %1097 = shalt.err (!%p1094_p1)
}
  0x24   :  { %25 = dma.hbm_to_vmem [thread:$0]  %s1373_s0, 128, %s23_s16, [#allocation3]  }
  0x25   :  { %s1098_s30 = scalar_lea.hbm %s1376_s3, 2048 }
  0x26   :  { %p1099_p2 = scmp.ne.s32.totalorder %s1376_s3, %s1098_s30  ;;  %p1102_p3 = scmp.lt.u32.totalorder %s1098_s30, %s1376_s3 }
  0x28   :  { %p1104_p4 = pnand %p1102_p3, %p1099_p2 }
  0x2a   :  { %1107 = shalt.err (!%p1104_p4)
}
  0x2b   :  { %s1108_s14 = scalar_lea.vmem %s46_s18, 2048  ;;  %p1113_p6 = scmp.lt.s32.totalorder %s46_s18, %s46_s18 }
  0x2c   :  { %p1109_p5 = scmp.ne.s32.totalorder %s46_s18, %s1108_s14  ;;  %p1114_p7 = scmp.lt.s32.totalorder %s1108_s14, %s1108_s14 }
  0x2e   :  { %p1115_p8 = por %p1114_p7, %p1113_p6 }
  0x30   :  { %p1116_p9 = pnand %p1115_p8, %p1109_p5 }
  0x32   :  { %1119 = shalt.err (!%p1116_p9)
}
  0x33   :  { %51 = dma.hbm_to_vmem [thread:$0]  %s1376_s3, 2048, %s46_s18, [#allocation6], %s1173_s11, %s1173_s11, %s1174_s12  }
  0x34   :  { %s1177_s16 = smov [#allocation8]   ;;  %s1120_s21 = scalar_lea.hbm %s1378_s5, 2048 }
  0x35   :  { %s59_s17 = sshll.u32 %s1177_s16, 4  ;;  %p1121_p10 = scmp.ne.s32.totalorder %s1378_s5, %s1120_s21  ;;  %s60_s17 = int_to_ptr.vmem [resolvable:$true] %s59_s17 }
  0x36   :  { %p1124_p11 = scmp.lt.u32.totalorder %s1120_s21, %s1378_s5 }
  0x38   :  { %p1126_p12 = pnand %p1124_p11, %p1121_p10 }
  0x3a   :  { %1129 = shalt.err (!%p1126_p12)
}
  0x3b   :  { %s1130_s1 = scalar_lea.vmem %s60_s17, 2048  ;;  %p1135_p0 = scmp.lt.s32.totalorder %s60_s17, %s60_s17 }
  0x3c   :  { %p1131_p13 = scmp.ne.s32.totalorder %s60_s17, %s1130_s1  ;;  %p1136_p1 = scmp.lt.s32.totalorder %s1130_s1, %s1130_s1 }
  0x3e   :  { %p1137_p2 = por %p1136_p1, %p1135_p0 }
  0x40   :  { %p1138_p3 = pnand %p1137_p2, %p1131_p13 }
  0x42   :  { %1141 = shalt.err (!%p1138_p3)
}
  0x43   :  { %65 = dma.hbm_to_vmem [thread:$0]  %s1378_s5, 2048, %s60_s17, [#allocation9], %s1173_s11, %s1173_s11, %s1174_s12  }
  0x44   :  { %1164 = dma.done.wait [#allocation3], 128  }
  0x45   :  { %1165 = vsyncadd [#allocation3], 4294967168 }
  0x46   :  { %1166 = dma.done.wait [#allocation6], 4096  }
  0x47   :  { %1167 = vsyncadd [#allocation6], 4294963200 }
  0x48   :  { %1168 = dma.done.wait [#allocation9], 2048  }
  0x49   :  { %1169 = vsyncadd [#allocation9], 4294965248  ;;  %v1178_v0 = vmov 0.0   ;;  %vm1179_vm0 = vmmov 0   ;;  %v1006_v1 = vld [vmem:[#allocation5] sm:$0xff]   ;;  %v1007_v2 = vld [vmem:[#allocation5 + $0x8] sm:$0xff]  }
  0x4a   :  { %877 = vmatprep.subr.bf16.mxu0 %v1178_v0  ;;  %893 = vmatprep.mubr.msk.bf16.mxu0 %vm1179_vm0, %v1178_v0  ;;  %v1008_v3 = vld [vmem:[#allocation5 + $0x10] sm:$0xff]   ;;  %v1014_v4 = vld [vmem:[#allocation7] sm:$0xff]   ;;  %v1009_v5 = vld [vmem:[#allocation5 + $0x18] sm:$0xff]   ;;  %s1180_s13 = smov [#allocation10]  }
  0x4b   :  { %897 = vmatprep.subr.bf16.mxu1 %v1178_v0  ;;  %913 = vmatprep.mubr.msk.bf16.mxu1 %vm1179_vm0, %v1178_v0  ;;  %v1015_v6 = vld [vmem:[#allocation7 + $0x8] sm:$0xff]   ;;  %v1010_v7 = vld [vmem:[#allocation5 + $0x20] sm:$0xff]   ;;  %v1016_v8 = vld [vmem:[#allocation7 + $0x10] sm:$0xff]   ;;  %s758_s14 = sshll.u32 %s1180_s13, 4  ;;  %s759_s14 = int_to_ptr.vmem [resolvable:$true] %s758_s14 }
  0x4c   :  { %878 = vmatpush3.bf16.msra.mxu0 %v1006_v1  ;;  %898 = vmatpush3.bf16.msra.mxu1 %v1014_v4  ;;  %v1011_v9 = vld [vmem:[#allocation5 + $0x28] sm:$0xff]   ;;  %v1017_v10 = vld [vmem:[#allocation7 + $0x18] sm:$0xff]   ;;  %v1012_v11 = vld [vmem:[#allocation5 + $0x30] sm:$0xff]   ;;  %p1147_p5 = scmp.lt.s32.totalorder %s759_s14, %s759_s14 }
  0x4d   :  { %879 = vmatprep.subr.bf16.mxu0 %v1178_v0  ;;  %899 = vmatprep.subr.bf16.mxu1 %v1178_v0  ;;  %v1018_v12 = vld [vmem:[#allocation7 + $0x20] sm:$0xff]   ;;  %v1013_v13 = vld [vmem:[#allocation5 + $0x38] sm:$0xff]   ;;  %v1019_v15 = vld [vmem:[#allocation7 + $0x28] sm:$0xff]  }
  0x4e   :  { %v1293_v14 = vld [vmem:[#allocation2] sm:$0xff]  ;;  %v1020_v17 = vld [vmem:[#allocation7 + $0x30] sm:$0xff]   ;;  %v1022_v19 = vld [vmem:[#allocation8] sm:$0xff]  }
  0x4f   :  { %v82_v16 = vpack.c.bf16 %v1293_v14, %v1293_v14  ;;  %v1021_v18 = vld [vmem:[#allocation7 + $0x38] sm:$0xff]   ;;  %v1023_v20 = vld [vmem:[#allocation8 + $0x8] sm:$0xff]   ;;  %v1024_v21 = vld [vmem:[#allocation8 + $0x10] sm:$0xff]  }
  0x50   :  { %880 = vmatpush3.bf16.msra.mxu0 %v1007_v2  ;;  %900 = vmatpush3.bf16.msra.mxu1 %v1015_v6  ;;  %v1025_v22 = vld [vmem:[#allocation8 + $0x18] sm:$0xff]   ;;  %v1026_v23 = vld [vmem:[#allocation8 + $0x20] sm:$0xff]   ;;  %v1027_v24 = vld [vmem:[#allocation8 + $0x28] sm:$0xff]  }
  0x51   :  { %881 = vmatprep.subr.bf16.mxu0 %v1178_v0  ;;  %901 = vmatprep.subr.bf16.mxu1 %v1178_v0  ;;  %v769_v25 = vld [vmem:[%s1375_s2] ss:$0 sm:$0xff]  ;;  %v1028_v33 = vld [vmem:[#allocation8 + $0x30] sm:$0xff]   ;;  %v1030_v35 = vld [vmem:[#allocation5 + $0x40] sm:$0xff]  }
  0x52   :  { %v1029_v34 = vld [vmem:[#allocation8 + $0x38] sm:$0xff]   ;;  %v1031_v36 = vld [vmem:[#allocation5 + $0x48] sm:$0xff]   ;;  %v1032_v37 = vld [vmem:[#allocation5 + $0x50] sm:$0xff]  }
  0x53   :  { %v1033_v38 = vld [vmem:[#allocation5 + $0x58] sm:$0xff]   ;;  %v1034_v39 = vld [vmem:[#allocation5 + $0x60] sm:$0xff]   ;;  %v1035_v40 = vld [vmem:[#allocation5 + $0x68] sm:$0xff]  }
  0x54   :  { %882 = vmatpush3.bf16.msra.mxu0 %v1008_v3  ;;  %902 = vmatpush3.bf16.msra.mxu1 %v1016_v8  ;;  %v778_v41 = vld [vmem:[%s1377_s4] ss:$0 sm:$0xff]  ;;  %v1036_v49 = vld [vmem:[#allocation5 + $0x70] sm:$0xff]   ;;  %v1038_v51 = vld [vmem:[#allocation7 + $0x40] sm:$0xff]  }
  0x55   :  { %883 = vmatprep.subr.bf16.mxu0 %v1178_v0  ;;  %903 = vmatprep.subr.bf16.mxu1 %v1178_v0  ;;  %v1037_v50 = vld [vmem:[#allocation5 + $0x78] sm:$0xff]   ;;  %v1039_v52 = vld [vmem:[#allocation7 + $0x48] sm:$0xff]   ;;  %v1040_v53 = vld [vmem:[#allocation7 + $0x50] sm:$0xff]  }
  0x56   :  { %v1041_v54 = vld [vmem:[#allocation7 + $0x58] sm:$0xff]   ;;  %v1042_v55 = vld [vmem:[#allocation7 + $0x60] sm:$0xff]   ;;  %v1043_v56 = vld [vmem:[#allocation7 + $0x68] sm:$0xff]  }
  0x57   :  { %v787_v57 = vld [vmem:[%s1379_s6] ss:$0 sm:$0xff]  ;;  %v1044_v2 = vld [vmem:[#allocation7 + $0x70] sm:$0xff]   ;;  %v1046_v4 = vld [vmem:[#allocation8 + $0x40] sm:$0xff]  }
  0x58   :  { %884 = vmatpush3.bf16.msra.mxu0 %v1009_v5  ;;  %904 = vmatpush3.bf16.msra.mxu1 %v1017_v10  ;;  %v1045_v3 = vld [vmem:[#allocation7 + $0x78] sm:$0xff]   ;;  %v1047_v5 = vld [vmem:[#allocation8 + $0x48] sm:$0xff]   ;;  %v1048_v6 = vld [vmem:[#allocation8 + $0x50] sm:$0xff]  }
  0x59   :  { %885 = vmatprep.subr.bf16.mxu0 %v1178_v0  ;;  %905 = vmatprep.subr.bf16.mxu1 %v1178_v0  ;;  %v1050_v8 = vld [vmem:[#allocation8 + $0x60] sm:$0xff]   ;;  %v796_v10 = vld [vmem:[%s1375_s2 + $0x1] ss:$0 sm:$0xff] }
  0x5c   :  { %886 = vmatpush3.bf16.msra.mxu0 %v1010_v7  ;;  %906 = vmatpush3.bf16.msra.mxu1 %v1018_v12  ;;  %v1049_v7 = vld [vmem:[#allocation8 + $0x58] sm:$0xff]  }
  0x5d   :  { %887 = vmatprep.subr.bf16.mxu0 %v1178_v0  ;;  %907 = vmatprep.subr.bf16.mxu1 %v1178_v0 }
  0x60   :  { %888 = vmatpush3.bf16.msra.mxu0 %v1011_v9  ;;  %908 = vmatpush3.bf16.msra.mxu1 %v1019_v15  ;;  %v1051_v9 = vld [vmem:[#allocation8 + $0x68] sm:$0xff]  }
  0x61   :  { %889 = vmatprep.subr.bf16.mxu0 %v1178_v0  ;;  %909 = vmatprep.subr.bf16.mxu1 %v1178_v0 }
  0x64   :  { %890 = vmatpush3.bf16.msra.mxu0 %v1012_v11  ;;  %910 = vmatpush3.bf16.msra.mxu1 %v1020_v17 }
  0x65   :  { %891 = vmatprep.subr.bf16.mxu0 %v1178_v0  ;;  %911 = vmatprep.subr.bf16.mxu1 %v1178_v0 }
  0x68   :  { %892 = vmatpush3.bf16.msra.mxu0 %v1013_v13  ;;  %912 = vmatpush3.bf16.msra.mxu1 %v1021_v18  ;;  %v1052_v18 = vld [vmem:[#allocation8 + $0x70] sm:$0xff]  }
  0x69   :  { %917 = vmatprep.subr.bf16.mxu0 %v1178_v0  ;;  %937 = vmatprep.subr.bf16.mxu1 %v1178_v0 }
  0x6b   :  { %894 = vmatmul.mubr.bf16.vlgmr.msra.gmra.mrb[0].mxu0 %v82_v16 }
  0x6c   :  { %933 = vmatprep.mubr.msk.bf16.mxu0 %vm1179_vm0, %v1178_v0  ;;  %918 = vmatpush3.bf16.msra.mxu0 %v1022_v19  ;;  %v1053_v19 = vld [vmem:[#allocation8 + $0x78] sm:$0xff]  }
  0x6d   :  { %919 = vmatprep.subr.bf16.mxu0 %v1178_v0 }
  0x70   :  { %920 = vmatpush3.bf16.msra.mxu0 %v1023_v20  ;;  %v805_v20 = vld [vmem:[%s1377_s4 + $0x1] ss:$0 sm:$0xff]  ;;  %s1142_s4 = scalar_lea.vmem %s759_s14, 128 }
  0x71   :  { %921 = vmatprep.subr.bf16.mxu0 %v1178_v0  ;;  %p1143_p4 = scmp.ne.s32.totalorder %s759_s14, %s1142_s4  ;;  %p1148_p6 = scmp.lt.s32.totalorder %s1142_s4, %s1142_s4 }
  0x73   :  { %p1149_p7 = por %p1148_p6, %p1147_p5 }
  0x74   :  { %922 = vmatpush3.bf16.msra.mxu0 %v1024_v21 }
  0x75   :  { %923 = vmatprep.subr.bf16.mxu0 %v1178_v0  ;;  %p1150_p8 = pnand %p1149_p7, %p1143_p4 }
  0x78   :  { %924 = vmatpush3.bf16.msra.mxu0 %v1025_v22 }
  0x79   :  { %925 = vmatprep.subr.bf16.mxu0 %v1178_v0 }
  0x7c   :  { %926 = vmatpush3.bf16.msra.mxu0 %v1026_v23 }
  0x7d   :  { %927 = vmatprep.subr.bf16.mxu0 %v1178_v0 }
  0x80   :  { %928 = vmatpush3.bf16.msra.mxu0 %v1027_v24 }
  0x81   :  { %929 = vmatprep.subr.bf16.mxu0 %v1178_v0 }
  0x84   :  { %930 = vmatpush3.bf16.msra.mxu0 %v1028_v33 }
  0x85   :  { %931 = vmatprep.subr.bf16.mxu0 %v1178_v0 }
  0x88   :  { %932 = vmatpush3.bf16.msra.mxu0 %v1029_v34 }
  0x89   :  { %957 = vmatprep.subr.bf16.mxu0 %v1178_v0 }
 0x13e   :  { %v186_v26 = vpop.f32.mrb[0].mxu0 }
 0x13f   :  { %v187_v27 = vadd.f32 %v769_v25, %v186_v26  ;;  %v895_v28 = vpop.f32.mrb[1].mxu0 }
 0x140   :  { %v189_v29 = vpop.f32.mrb[2].mxu0  ;;  %v814_v28 = vld [vmem:[%s1379_s6 + $0x1] ss:$0 sm:$0xff] }
 0x141   :  { %v192_v30 = vmax.f32 %v187_v27, 0.0  ;;  %v896_v31 = vpop.f32.mrb[3].mxu0 }
 0x143   :  { %v193_v32 = vpack.c.bf16 %v192_v30, %v192_v30 }
 0x145   :  { %914 = vmatmul.mubr.bf16.vlgmr.msra.gmra.mrb[0].mxu1 %v193_v32 }
 0x146   :  { %953 = vmatprep.mubr.msk.bf16.mxu1 %vm1179_vm0, %v1178_v0  ;;  %938 = vmatpush3.bf16.msra.mxu1 %v1030_v35 }
 0x147   :  { %939 = vmatprep.subr.bf16.mxu1 %v1178_v0 }
 0x14a   :  { %940 = vmatpush3.bf16.msra.mxu1 %v1031_v36 }
 0x14b   :  { %941 = vmatprep.subr.bf16.mxu1 %v1178_v0 }
 0x14e   :  { %942 = vmatpush3.bf16.msra.mxu1 %v1032_v37 }
 0x14f   :  { %943 = vmatprep.subr.bf16.mxu1 %v1178_v0 }
 0x152   :  { %944 = vmatpush3.bf16.msra.mxu1 %v1033_v38 }
 0x153   :  { %945 = vmatprep.subr.bf16.mxu1 %v1178_v0 }
 0x156   :  { %946 = vmatpush3.bf16.msra.mxu1 %v1034_v39 }
 0x157   :  { %947 = vmatprep.subr.bf16.mxu1 %v1178_v0 }
 0x15a   :  { %948 = vmatpush3.bf16.msra.mxu1 %v1035_v40 }
 0x15b   :  { %949 = vmatprep.subr.bf16.mxu1 %v1178_v0 }
 0x15e   :  { %950 = vmatpush3.bf16.msra.mxu1 %v1036_v49 }
 0x15f   :  { %951 = vmatprep.subr.bf16.mxu1 %v1178_v0 }
 0x162   :  { %952 = vmatpush3.bf16.msra.mxu1 %v1037_v50 }
 0x163   :  { %977 = vmatprep.subr.bf16.mxu1 %v1178_v0 }
 0x218   :  { %v297_v42 = vpop.f32.mrb[0].mxu1 }
 0x219   :  { %v298_v43 = vadd.f32 %v778_v41, %v297_v42  ;;  %v915_v44 = vpop.f32.mrb[1].mxu1 }
 0x21a   :  { %v300_v45 = vpop.f32.mrb[2].mxu1 }
 0x21b   :  { %v303_v46 = vmax.f32 %v298_v43, 0.0  ;;  %v916_v47 = vpop.f32.mrb[3].mxu1 }
 0x21d   :  { %v304_v48 = vpack.c.bf16 %v303_v46, %v303_v46 }
 0x21f   :  { %934 = vmatmul.mubr.bf16.vlgmr.msra.gmra.mrb[4].mxu0 %v304_v48 }
 0x220   :  { %973 = vmatprep.mubr.msk.bf16.mxu0 %vm1179_vm0, %v1178_v0  ;;  %958 = vmatpush3.bf16.msra.mxu0 %v1038_v51 }
 0x221   :  { %959 = vmatprep.subr.bf16.mxu0 %v1178_v0 }
 0x224   :  { %960 = vmatpush3.bf16.msra.mxu0 %v1039_v52 }
 0x225   :  { %961 = vmatprep.subr.bf16.mxu0 %v1178_v0 }
 0x228   :  { %962 = vmatpush3.bf16.msra.mxu0 %v1040_v53 }
 0x229   :  { %963 = vmatprep.subr.bf16.mxu0 %v1178_v0 }
 0x22c   :  { %964 = vmatpush3.bf16.msra.mxu0 %v1041_v54 }
 0x22d   :  { %965 = vmatprep.subr.bf16.mxu0 %v1178_v0 }
 0x230   :  { %966 = vmatpush3.bf16.msra.mxu0 %v1042_v55 }
 0x231   :  { %967 = vmatprep.subr.bf16.mxu0 %v1178_v0 }
 0x234   :  { %968 = vmatpush3.bf16.msra.mxu0 %v1043_v56 }
 0x235   :  { %969 = vmatprep.subr.bf16.mxu0 %v1178_v0 }
 0x238   :  { %970 = vmatpush3.bf16.msra.mxu0 %v1044_v2 }
 0x239   :  { %971 = vmatprep.subr.bf16.mxu0 %v1178_v0 }
 0x23c   :  { %972 = vmatpush3.bf16.msra.mxu0 %v1045_v3 }
 0x2f2   :  { %v408_v58 = vpop.f32.mrb[4].mxu0 }
 0x2f3   :  { %v409_v59 = vadd.f32 %v787_v57, %v408_v58  ;;  %v935_v60 = vpop.f32.mrb[5].mxu0 }
 0x2f4   :  { %v411_v61 = vpop.f32.mrb[6].mxu0 }
 0x2f5   :  { %v414_v62 = vadd.f32 %v409_v59, %v1293_v14  ;;  %v936_v63 = vpop.f32.mrb[7].mxu0 }
 0x2f7   :  { %v415_v1 = vpack.c.bf16 %v414_v62, %v414_v62 }
 0x2f9   :  { %954 = vmatmul.mubr.bf16.vlgmr.msra.gmra.mrb[4].mxu1 %v415_v1 }
 0x2fa   :  { %993 = vmatprep.mubr.msk.bf16.mxu1 %vm1179_vm0, %v1178_v0  ;;  %978 = vmatpush3.bf16.msra.mxu1 %v1046_v4 }
 0x2fb   :  { %979 = vmatprep.subr.bf16.mxu1 %v1178_v0 }
 0x2fe   :  { %980 = vmatpush3.bf16.msra.mxu1 %v1047_v5 }
 0x2ff   :  { %981 = vmatprep.subr.bf16.mxu1 %v1178_v0 }
 0x302   :  { %982 = vmatpush3.bf16.msra.mxu1 %v1048_v6 }
 0x303   :  { %983 = vmatprep.subr.bf16.mxu1 %v1178_v0 }
 0x306   :  { %984 = vmatpush3.bf16.msra.mxu1 %v1049_v7 }
 0x307   :  { %985 = vmatprep.subr.bf16.mxu1 %v1178_v0 }
 0x30a   :  { %986 = vmatpush3.bf16.msra.mxu1 %v1050_v8 }
 0x30b   :  { %987 = vmatprep.subr.bf16.mxu1 %v1178_v0 }
 0x30e   :  { %988 = vmatpush3.bf16.msra.mxu1 %v1051_v9 }
 0x30f   :  { %989 = vmatprep.subr.bf16.mxu1 %v1178_v0 }
 0x312   :  { %990 = vmatpush3.bf16.msra.mxu1 %v1052_v18 }
 0x313   :  { %991 = vmatprep.subr.bf16.mxu1 %v1178_v0 }
 0x316   :  { %992 = vmatpush3.bf16.msra.mxu1 %v1053_v19 }
 0x3cc   :  { %v520_v11 = vpop.f32.mrb[4].mxu1 }
 0x3cd   :  { %v521_v12 = vadd.f32 %v796_v10, %v520_v11  ;;  %v955_v13 = vpop.f32.mrb[5].mxu1 }
 0x3ce   :  { %v523_v14 = vpop.f32.mrb[6].mxu1 }
 0x3cf   :  { %v526_v15 = vmax.f32 %v521_v12, 0.0  ;;  %v956_v16 = vpop.f32.mrb[7].mxu1 }
 0x3d1   :  { %v527_v17 = vpack.c.bf16 %v526_v15, %v526_v15 }
 0x3d3   :  { %974 = vmatmul.mubr.bf16.vlgmr.msra.gmra.mrb[8].mxu0 %v527_v17 }
 0x4a6   :  { %v632_v21 = vpop.f32.mrb[8].mxu0 }
 0x4a7   :  { %v633_v22 = vadd.f32 %v805_v20, %v632_v21  ;;  %v975_v23 = vpop.f32.mrb[9].mxu0 }
 0x4a8   :  { %v635_v24 = vpop.f32.mrb[10].mxu0 }
 0x4a9   :  { %v638_v25 = vmax.f32 %v633_v22, 0.0  ;;  %v976_v26 = vpop.f32.mrb[11].mxu0 }
 0x4ab   :  { %v639_v27 = vpack.c.bf16 %v638_v25, %v638_v25 }
 0x4ad   :  { %994 = vmatmul.mubr.bf16.vlgmr.msra.gmra.mrb[8].mxu1 %v639_v27 }
 0x580   :  { %v744_v29 = vpop.f32.mrb[8].mxu1 }
 0x581   :  { %v745_v0 = vadd.f32 %v814_v28, %v744_v29  ;;  %v995_v30 = vpop.f32.mrb[9].mxu1 }
 0x582   :  { %v747_v31 = vpop.f32.mrb[10].mxu1 }
 0x583   :  { %v750_v32 = vadd.f32 %v745_v0, %v414_v62  ;;  %v996_v33 = vpop.f32.mrb[11].mxu1 }
 0x585   :  { %751 = vst [vmem:[#allocation10] sm:$0xff] %v750_v32 }
 0x586   :  { %1153 = shalt.err (!%p1150_p8)
}
 0x587   :  { %s1154_s6 = scalar_lea.hbm %s1380_s7, 128 }
 0x588   :  { %p1155_p9 = scmp.ne.s32.totalorder %s1380_s7, %s1154_s6  ;;  %p1158_p10 = scmp.lt.u32.totalorder %s1154_s6, %s1380_s7 }
 0x58a   :  { %p1160_p11 = pnand %p1158_p10, %p1155_p9 }
 0x58c   :  { %1163 = shalt.err (!%p1160_p11)
}
 0x58d   :  { %761 = dma.vmem_to_hbm [thread:$0]  %s759_s14, 128, %s1380_s7, [#allocation4]  }
 0x58e   :  { %1170 = dma.done.wait [#allocation4], 128  }
 0x58f   :  { %1171 = vsyncadd [#allocation4], 4294967168 }
 0x590   :  { %765 = vsyncpa [#allocation3], 1 }
 0x591   :  { %766 = vsyncpa [#allocation6], 1 }
 0x592   :  { %767 = vsyncpa [#allocation9], 1 }
 0x593   :  { %768 = vsyncpa [#allocation4], 1 }

// kernel: tpu_custom_call.1
= control target key start
LH: loop header
LB: loop body
LE: loop exit
PB: predicated region body
PF: predicated region fallthrough
CT: control target
= control target key end

     0   :  { %12 = vsyncpa [#allocation3], 0  ;;  %s1373_s0 = inlined_call_operand.hbm [shape: f32[8,128], index: 0, kind: input, shape index: {}, may-alias: {0,7}]   ;;  %s1374_s1 = inlined_call_operand.hbm [shape: bf16[2,128,128], index: 1, kind: input, shape index: {}]   ;;  %s1375_s2 = inlined_call_operand.vmem [shape: f32[2,128], index: 2, kind: input, shape index: {}]   ;;  %s1376_s3 = inlined_call_operand.hbm [shape: bf16[2,128,128], index: 3, kind: input, shape index: {}]   ;;  %s1377_s4 = inlined_call_operand.vmem [shape: f32[2,128], index: 4, kind: input, shape index: {}]   ;;  %s1378_s5 = inlined_call_operand.hbm [shape: bf16[2,128,128], index: 5, kind: input, shape index: {}]   ;;  %s1379_s6 = inlined_call_operand.vmem [shape: f32[2,128], index: 6, kind: input, shape index: {}]   ;;  %s1380_s7 = inlined_call_operand.hbm [shape: f32[8,128], index: 7, kind: output, shape index: {}, may-alias: {0,7}]  }
   0x1   :  { %13 = vsyncpa [#allocation6], 0 }
   0x2   :  { %14 = vsyncpa [#allocation9], 0 }
   0x3   :  { %15 = vsyncpa [#allocation4], 0  ;;  %s1172_s24 = smov [#allocation5]   ;;  %s1054_s28 = scalar_lea.hbm %s1374_s1, 2048 }
   0x4   :  { %s31_s25 = sshll.u32 %s1172_s24, 4  ;;  %p1055_p0 = scmp.ne.s32.totalorder %s1374_s1, %s1054_s28  ;;  %s32_s25 = int_to_ptr.vmem [resolvable:$true] %s31_s25 }
   0x5   :  { %p1058_p1 = scmp.lt.u32.totalorder %s1054_s28, %s1374_s1 }
   0x7   :  { %p1060_p2 = pnand %p1058_p1, %p1055_p0 }
   0x9   :  { %1063 = shalt.err (!%p1060_p2)
}
   0xa   :  { %s1064_s10 = scalar_lea.vmem %s32_s25, 2048  ;;  %p1069_p4 = scmp.lt.s32.totalorder %s32_s25, %s32_s25 }
   0xb   :  { %p1065_p3 = scmp.ne.s32.totalorder %s32_s25, %s1064_s10  ;;  %p1070_p5 = scmp.lt.s32.totalorder %s1064_s10, %s1064_s10 }
   0xd   :  { %p1071_p6 = por %p1070_p5, %p1069_p4 }
   0xf   :  { %p1072_p7 = pnand %p1071_p6, %p1065_p3 }
  0x11   :  { %1075 = shalt.err (!%p1072_p7)
}
  0x12   :  { %s1173_s11 = smov 64   ;;  %s1174_s12 = smov 4  }
  0x13   :  { %37 = dma.hbm_to_vmem [thread:$0]  %s1374_s1, 2048, %s32_s25, [#allocation6], %s1173_s11, %s1173_s11, %s1174_s12  }
  0x14   :  { %s1175_s15 = smov [#allocation2]   ;;  %s1176_s17 = smov [#allocation7]  }
  0x15   :  { %s22_s16 = sshll.u32 %s1175_s15, 4  ;;  %s45_s18 = sshll.u32 %s1176_s17, 4  ;;  %s23_s16 = int_to_ptr.vmem [resolvable:$true] %s22_s16  ;;  %s46_s18 = int_to_ptr.vmem [resolvable:$true] %s45_s18 }
  0x16   :  { %s1076_s21 = scalar_lea.hbm %s1373_s0, 128 }
  0x17   :  { %p1077_p8 = scmp.ne.s32.totalorder %s1373_s0, %s1076_s21  ;;  %p1080_p9 = scmp.lt.u32.totalorder %s1076_s21, %s1373_s0 }
  0x19   :  { %p1082_p10 = pnand %p1080_p9, %p1077_p8 }
  0x1b   :  { %1085 = shalt.err (!%p1082_p10)
}
  0x1c   :  { %s1086_s1 = scalar_lea.vmem %s23_s16, 128  ;;  %p1091_p12 = scmp.lt.s32.totalorder %s23_s16, %s23_s16 }
  0x1d   :  { %p1087_p11 = scmp.ne.s32.totalorder %s23_s16, %s1086_s1  ;;  %p1092_p13 = scmp.lt.s32.totalorder %s1086_s1, %s1086_s1 }
  0x1f   :  { %p1093_p0 = por %p1092_p13, %p1091_p12 }
  0x21   :  { %p1094_p1 = pnand %p1093_p0, %p1087_p11 }
  0x23   :  { %1097 = shalt.err (!%p1094_p1)
}
  0x24   :  { %25 = dma.hbm_to_vmem [thread:$0]  %s1373_s0, 128, %s23_s16, [#allocation3]  }
  0x25   :  { %s1098_s30 = scalar_lea.hbm %s1376_s3, 2048 }
  0x26   :  { %p1099_p2 = scmp.ne.s32.totalorder %s1376_s3, %s1098_s30  ;;  %p1102_p3 = scmp.lt.u32.totalorder %s1098_s30, %s1376_s3 }
  0x28   :  { %p1104_p4 = pnand %p1102_p3, %p1099_p2 }
  0x2a   :  { %1107 = shalt.err (!%p1104_p4)
}
  0x2b   :  { %s1108_s14 = scalar_lea.vmem %s46_s18, 2048  ;;  %p1113_p6 = scmp.lt.s32.totalorder %s46_s18, %s46_s18 }
  0x2c   :  { %p1109_p5 = scmp.ne.s32.totalorder %s46_s18, %s1108_s14  ;;  %p1114_p7 = scmp.lt.s32.totalorder %s1108_s14, %s1108_s14 }
  0x2e   :  { %p1115_p8 = por %p1114_p7, %p1113_p6 }
  0x30   :  { %p1116_p9 = pnand %p1115_p8, %p1109_p5 }
  0x32   :  { %1119 = shalt.err (!%p1116_p9)
}
  0x33   :  { %51 = dma.hbm_to_vmem [thread:$0]  %s1376_s3, 2048, %s46_s18, [#allocation6], %s1173_s11, %s1173_s11, %s1174_s12  }
  0x34   :  { %s1177_s16 = smov [#allocation8]   ;;  %s1120_s21 = scalar_lea.hbm %s1378_s5, 2048 }
  0x35   :  { %s59_s17 = sshll.u32 %s1177_s16, 4  ;;  %p1121_p10 = scmp.ne.s32.totalorder %s1378_s5, %s1120_s21  ;;  %s60_s17 = int_to_ptr.vmem [resolvable:$true] %s59_s17 }
  0x36   :  { %p1124_p11 = scmp.lt.u32.totalorder %s1120_s21, %s1378_s5 }
  0x38   :  { %p1126_p12 = pnand %p1124_p11, %p1121_p10 }
  0x3a   :  { %1129 = shalt.err (!%p1126_p12)
}
  0x3b   :  { %s1130_s1 = scalar_lea.vmem %s60_s17, 2048  ;;  %p1135_p0 = scmp.lt.s32.totalorder %s60_s17, %s60_s17 }
  0x3c   :  { %p1131_p13 = scmp.ne.s32.totalorder %s60_s17, %s1130_s1  ;;  %p1136_p1 = scmp.lt.s32.totalorder %s1130_s1, %s1130_s1 }
  0x3e   :  { %p1137_p2 = por %p1136_p1, %p1135_p0 }
  0x40   :  { %p1138_p3 = pnand %p1137_p2, %p1131_p13 }
  0x42   :  { %1141 = shalt.err (!%p1138_p3)
}
  0x43   :  { %65 = dma.hbm_to_vmem [thread:$0]  %s1378_s5, 2048, %s60_s17, [#allocation9], %s1173_s11, %s1173_s11, %s1174_s12  }
  0x44   :  { %1164 = dma.done.wait [#allocation3], 128  }
  0x45   :  { %1165 = vsyncadd [#allocation3], 4294967168 }
  0x46   :  { %1166 = dma.done.wait [#allocation6], 4096  }
  0x47   :  { %1167 = vsyncadd [#allocation6], 4294963200 }
  0x48   :  { %1168 = dma.done.wait [#allocation9], 2048  }
  0x49   :  { %1169 = vsyncadd [#allocation9], 4294965248  ;;  %v1178_v0 = vmov 0.0   ;;  %vm1179_vm0 = vmmov 0   ;;  %v1006_v1 = vld [vmem:[#allocation5] sm:$0xff]   ;;  %v1007_v2 = vld [vmem:[#allocation5 + $0x8] sm:$0xff]  }
  0x4a   :  { %877 = vmatprep.subr.bf16.mxu0 %v1178_v0  ;;  %893 = vmatprep.mubr.msk.bf16.mxu0 %vm1179_vm0, %v1178_v0  ;;  %v1008_v3 = vld [vmem:[#allocation5 + $0x10] sm:$0xff]   ;;  %v1014_v4 = vld [vmem:[#allocation7] sm:$0xff]   ;;  %v1009_v5 = vld [vmem:[#allocation5 + $0x18] sm:$0xff]   ;;  %s1180_s13 = smov [#allocation10]  }
  0x4b   :  { %897 = vmatprep.subr.bf16.mxu1 %v1178_v0  ;;  %913 = vmatprep.mubr.msk.bf16.mxu1 %vm1179_vm0, %v1178_v0  ;;  %v1015_v6 = vld [vmem:[#allocation7 + $0x8] sm:$0xff]   ;;  %v1010_v7 = vld [vmem:[#allocation5 + $0x20] sm:$0xff]   ;;  %v1016_v8 = vld [vmem:[#allocation7 + $0x10] sm:$0xff]   ;;  %s758_s14 = sshll.u32 %s1180_s13, 4  ;;  %s759_s14 = int_to_ptr.vmem [resolvable:$true] %s758_s14 }
  0x4c   :  { %878 = vmatpush3.bf16.msra.mxu0 %v1006_v1  ;;  %898 = vmatpush3.bf16.msra.mxu1 %v1014_v4  ;;  %v1011_v9 = vld [vmem:[#allocation5 + $0x28] sm:$0xff]   ;;  %v1017_v10 = vld [vmem:[#allocation7 + $0x18] sm:$0xff]   ;;  %v1012_v11 = vld [vmem:[#allocation5 + $0x30] sm:$0xff]   ;;  %p1147_p5 = scmp.lt.s32.totalorder %s759_s14, %s759_s14 }
  0x4d   :  { %879 = vmatprep.subr.bf16.mxu0 %v1178_v0  ;;  %899 = vmatprep.subr.bf16.mxu1 %v1178_v0  ;;  %v1018_v12 = vld [vmem:[#allocation7 + $0x20] sm:$0xff]   ;;  %v1013_v13 = vld [vmem:[#allocation5 + $0x38] sm:$0xff]   ;;  %v1019_v15 = vld [vmem:[#allocation7 + $0x28] sm:$0xff]  }
  0x4e   :  { %v1293_v14 = vld [vmem:[#allocation2] sm:$0xff]  ;;  %v1020_v17 = vld [vmem:[#allocation7 + $0x30] sm:$0xff]   ;;  %v1022_v19 = vld [vmem:[#allocation8] sm:$0xff]  }
  0x4f   :  { %v82_v16 = vpack.c.bf16 %v1293_v14, %v1293_v14  ;;  %v1021_v18 = vld [vmem:[#allocation7 + $0x38] sm:$0xff]   ;;  %v1023_v20 = vld [vmem:[#allocation8 + $0x8] sm:$0xff]   ;;  %v1024_v21 = vld [vmem:[#allocation8 + $0x10] sm:$0xff]  }
  0x50   :  { %880 = vmatpush3.bf16.msra.mxu0 %v1007_v2  ;;  %900 = vmatpush3.bf16.msra.mxu1 %v1015_v6  ;;  %v1025_v22 = vld [vmem:[#allocation8 + $0x18] sm:$0xff]   ;;  %v1026_v23 = vld [vmem:[#allocation8 + $0x20] sm:$0xff]   ;;  %v1027_v24 = vld [vmem:[#allocation8 + $0x28] sm:$0xff]  }
  0x51   :  { %881 = vmatprep.subr.bf16.mxu0 %v1178_v0  ;;  %901 = vmatprep.subr.bf16.mxu1 %v1178_v0  ;;  %v769_v25 = vld [vmem:[%s1375_s2] ss:$0 sm:$0xff]  ;;  %v1028_v33 = vld [vmem:[#allocation8 + $0x30] sm:$0xff]   ;;  %v1030_v35 = vld [vmem:[#allocation5 + $0x40] sm:$0xff]  }
  0x52   :  { %v1029_v34 = vld [vmem:[#allocation8 + $0x38] sm:$0xff]   ;;  %v1031_v36 = vld [vmem:[#allocation5 + $0x48] sm:$0xff]   ;;  %v1032_v37 = vld [vmem:[#allocation5 + $0x50] sm:$0xff]  }
  0x53   :  { %v1033_v38 = vld [vmem:[#allocation5 + $0x58] sm:$0xff]   ;;  %v1034_v39 = vld [vmem:[#allocation5 + $0x60] sm:$0xff]   ;;  %v1035_v40 = vld [vmem:[#allocation5 + $0x68] sm:$0xff]  }
  0x54   :  { %882 = vmatpush3.bf16.msra.mxu0 %v1008_v3  ;;  %902 = vmatpush3.bf16.msra.mxu1 %v1016_v8  ;;  %v778_v41 = vld [vmem:[%s1377_s4] ss:$0 sm:$0xff]  ;;  %v1036_v49 = vld [vmem:[#allocation5 + $0x70] sm:$0xff]   ;;  %v1038_v51 = vld [vmem:[#allocation7 + $0x40] sm:$0xff]  }
  0x55   :  { %883 = vmatprep.subr.bf16.mxu0 %v1178_v0  ;;  %903 = vmatprep.subr.bf16.mxu1 %v1178_v0  ;;  %v1037_v50 = vld [vmem:[#allocation5 + $0x78] sm:$0xff]   ;;  %v1039_v52 = vld [vmem:[#allocation7 + $0x48] sm:$0xff]   ;;  %v1040_v53 = vld [vmem:[#allocation7 + $0x50] sm:$0xff]  }
  0x56   :  { %v1041_v54 = vld [vmem:[#allocation7 + $0x58] sm:$0xff]   ;;  %v1042_v55 = vld [vmem:[#allocation7 + $0x60] sm:$0xff]   ;;  %v1043_v56 = vld [vmem:[#allocation7 + $0x68] sm:$0xff]  }
  0x57   :  { %v787_v57 = vld [vmem:[%s1379_s6] ss:$0 sm:$0xff]  ;;  %v1044_v2 = vld [vmem:[#allocation7 + $0x70] sm:$0xff]   ;;  %v1046_v4 = vld [vmem:[#allocation8 + $0x40] sm:$0xff]  }
  0x58   :  { %884 = vmatpush3.bf16.msra.mxu0 %v1009_v5  ;;  %904 = vmatpush3.bf16.msra.mxu1 %v1017_v10  ;;  %v1045_v3 = vld [vmem:[#allocation7 + $0x78] sm:$0xff]   ;;  %v1047_v5 = vld [vmem:[#allocation8 + $0x48] sm:$0xff]   ;;  %v1048_v6 = vld [vmem:[#allocation8 + $0x50] sm:$0xff]  }
  0x59   :  { %885 = vmatprep.subr.bf16.mxu0 %v1178_v0  ;;  %905 = vmatprep.subr.bf16.mxu1 %v1178_v0  ;;  %v1050_v8 = vld [vmem:[#allocation8 + $0x60] sm:$0xff]   ;;  %v796_v10 = vld [vmem:[%s1375_s2 + $0x1] ss:$0 sm:$0xff] }
  0x5c   :  { %886 = vmatpush3.bf16.msra.mxu0 %v1010_v7  ;;  %906 = vmatpush3.bf16.msra.mxu1 %v1018_v12  ;;  %v1049_v7 = vld [vmem:[#allocation8 + $0x58] sm:$0xff]  }
  0x5d   :  { %887 = vmatprep.subr.bf16.mxu0 %v1178_v0  ;;  %907 = vmatprep.subr.bf16.mxu1 %v1178_v0 }
  0x60   :  { %888 = vmatpush3.bf16.msra.mxu0 %v1011_v9  ;;  %908 = vmatpush3.bf16.msra.mxu1 %v1019_v15  ;;  %v1051_v9 = vld [vmem:[#allocation8 + $0x68] sm:$0xff]  }
  0x61   :  { %889 = vmatprep.subr.bf16.mxu0 %v1178_v0  ;;  %909 = vmatprep.subr.bf16.mxu1 %v1178_v0 }
  0x64   :  { %890 = vmatpush3.bf16.msra.mxu0 %v1012_v11  ;;  %910 = vmatpush3.bf16.msra.mxu1 %v1020_v17 }
  0x65   :  { %891 = vmatprep.subr.bf16.mxu0 %v1178_v0  ;;  %911 = vmatprep.subr.bf16.mxu1 %v1178_v0 }
  0x68   :  { %892 = vmatpush3.bf16.msra.mxu0 %v1013_v13  ;;  %912 = vmatpush3.bf16.msra.mxu1 %v1021_v18  ;;  %v1052_v18 = vld [vmem:[#allocation8 + $0x70] sm:$0xff]  }
  0x69   :  { %917 = vmatprep.subr.bf16.mxu0 %v1178_v0  ;;  %937 = vmatprep.subr.bf16.mxu1 %v1178_v0 }
  0x6b   :  { %894 = vmatmul.mubr.bf16.vlgmr.msra.gmra.mrb[0].mxu0 %v82_v16 }
  0x6c   :  { %933 = vmatprep.mubr.msk.bf16.mxu0 %vm1179_vm0, %v1178_v0  ;;  %918 = vmatpush3.bf16.msra.mxu0 %v1022_v19  ;;  %v1053_v19 = vld [vmem:[#allocation8 + $0x78] sm:$0xff]  }
  0x6d   :  { %919 = vmatprep.subr.bf16.mxu0 %v1178_v0 }
  0x70   :  { %920 = vmatpush3.bf16.msra.mxu0 %v1023_v20  ;;  %v805_v20 = vld [vmem:[%s1377_s4 + $0x1] ss:$0 sm:$0xff]  ;;  %s1142_s4 = scalar_lea.vmem %s759_s14, 128 }
  0x71   :  { %921 = vmatprep.subr.bf16.mxu0 %v1178_v0  ;;  %p1143_p4 = scmp.ne.s32.totalorder %s759_s14, %s1142_s4  ;;  %p1148_p6 = scmp.lt.s32.totalorder %s1142_s4, %s1142_s4 }
  0x73   :  { %p1149_p7 = por %p1148_p6, %p1147_p5 }
  0x74   :  { %922 = vmatpush3.bf16.msra.mxu0 %v1024_v21 }
  0x75   :  { %923 = vmatprep.subr.bf16.mxu0 %v1178_v0  ;;  %p1150_p8 = pnand %p1149_p7, %p1143_p4 }
  0x78   :  { %924 = vmatpush3.bf16.msra.mxu0 %v1025_v22 }
  0x79   :  { %925 = vmatprep.subr.bf16.mxu0 %v1178_v0 }
  0x7c   :  { %926 = vmatpush3.bf16.msra.mxu0 %v1026_v23 }
  0x7d   :  { %927 = vmatprep.subr.bf16.mxu0 %v1178_v0 }
  0x80   :  { %928 = vmatpush3.bf16.msra.mxu0 %v1027_v24 }
  0x81   :  { %929 = vmatprep.subr.bf16.mxu0 %v1178_v0 }
  0x84   :  { %930 = vmatpush3.bf16.msra.mxu0 %v1028_v33 }
  0x85   :  { %931 = vmatprep.subr.bf16.mxu0 %v1178_v0 }
  0x88   :  { %932 = vmatpush3.bf16.msra.mxu0 %v1029_v34 }
  0x89   :  { %957 = vmatprep.subr.bf16.mxu0 %v1178_v0 }
 0x13e   :  { %v186_v26 = vpop.f32.mrb[0].mxu0 }
 0x13f   :  { %v187_v27 = vadd.f32 %v769_v25, %v186_v26  ;;  %v895_v28 = vpop.f32.mrb[1].mxu0 }
 0x140   :  { %v189_v29 = vpop.f32.mrb[2].mxu0  ;;  %v814_v28 = vld [vmem:[%s1379_s6 + $0x1] ss:$0 sm:$0xff] }
 0x141   :  { %v192_v30 = vmax.f32 %v187_v27, 0.0  ;;  %v896_v31 = vpop.f32.mrb[3].mxu0 }
 0x143   :  { %v193_v32 = vpack.c.bf16 %v192_v30, %v192_v30 }
 0x145   :  { %914 = vmatmul.mubr.bf16.vlgmr.msra.gmra.mrb[0].mxu1 %v193_v32 }
 0x146   :  { %953 = vmatprep.mubr.msk.bf16.mxu1 %vm1179_vm0, %v1178_v0  ;;  %938 = vmatpush3.bf16.msra.mxu1 %v1030_v35 }
 0x147   :  { %939 = vmatprep.subr.bf16.mxu1 %v1178_v0 }
 0x14a   :  { %940 = vmatpush3.bf16.msra.mxu1 %v1031_v36 }
 0x14b   :  { %941 = vmatprep.subr.bf16.mxu1 %v1178_v0 }
 0x14e   :  { %942 = vmatpush3.bf16.msra.mxu1 %v1032_v37 }
 0x14f   :  { %943 = vmatprep.subr.bf16.mxu1 %v1178_v0 }
 0x152   :  { %944 = vmatpush3.bf16.msra.mxu1 %v1033_v38 }
 0x153   :  { %945 = vmatprep.subr.bf16.mxu1 %v1178_v0 }
 0x156   :  { %946 = vmatpush3.bf16.msra.mxu1 %v1034_v39 }
 0x157   :  { %947 = vmatprep.subr.bf16.mxu1 %v1178_v0 }
 0x15a   :  { %948 = vmatpush3.bf16.msra.mxu1 %v1035_v40 }
 0x15b   :  { %949 = vmatprep.subr.bf16.mxu1 %v1178_v0 }
 0x15e   :  { %950 = vmatpush3.bf16.msra.mxu1 %v1036_v49 }
 0x15f   :  { %951 = vmatprep.subr.bf16.mxu1 %v1178_v0 }
 0x162   :  { %952 = vmatpush3.bf16.msra.mxu1 %v1037_v50 }
 0x163   :  { %977 = vmatprep.subr.bf16.mxu1 %v1178_v0 }
 0x218   :  { %v297_v42 = vpop.f32.mrb[0].mxu1 }
 0x219   :  { %v298_v43 = vadd.f32 %v778_v41, %v297_v42  ;;  %v915_v44 = vpop.f32.mrb[1].mxu1 }
 0x21a   :  { %v300_v45 = vpop.f32.mrb[2].mxu1 }
 0x21b   :  { %v303_v46 = vmax.f32 %v298_v43, 0.0  ;;  %v916_v47 = vpop.f32.mrb[3].mxu1 }
 0x21d   :  { %v304_v48 = vpack.c.bf16 %v303_v46, %v303_v46 }
 0x21f   :  { %934 = vmatmul.mubr.bf16.vlgmr.msra.gmra.mrb[4].mxu0 %v304_v48 }
 0x220   :  { %973 = vmatprep.mubr.msk.bf16.mxu0 %vm1179_vm0, %v1178_v0  ;;  %958 = vmatpush3.bf16.msra.mxu0 %v1038_v51 }
 0x221   :  { %959 = vmatprep.subr.bf16.mxu0 %v1178_v0 }
 0x224   :  { %960 = vmatpush3.bf16.msra.mxu0 %v1039_v52 }
 0x225   :  { %961 = vmatprep.subr.bf16.mxu0 %v1178_v0 }
 0x228   :  { %962 = vmatpush3.bf16.msra.mxu0 %v1040_v53 }
 0x229   :  { %963 = vmatprep.subr.bf16.mxu0 %v1178_v0 }
 0x22c   :  { %964 = vmatpush3.bf16.msra.mxu0 %v1041_v54 }
 0x22d   :  { %965 = vmatprep.subr.bf16.mxu0 %v1178_v0 }
 0x230   :  { %966 = vmatpush3.bf16.msra.mxu0 %v1042_v55 }
 0x231   :  { %967 = vmatprep.subr.bf16.mxu0 %v1178_v0 }
 0x234   :  { %968 = vmatpush3.bf16.msra.mxu0 %v1043_v56 }
 0x235   :  { %969 = vmatprep.subr.bf16.mxu0 %v1178_v0 }
 0x238   :  { %970 = vmatpush3.bf16.msra.mxu0 %v1044_v2 }
 0x239   :  { %971 = vmatprep.subr.bf16.mxu0 %v1178_v0 }
 0x23c   :  { %972 = vmatpush3.bf16.msra.mxu0 %v1045_v3 }
 0x2f2   :  { %v408_v58 = vpop.f32.mrb[4].mxu0 }
 0x2f3   :  { %v409_v59 = vadd.f32 %v787_v57, %v408_v58  ;;  %v935_v60 = vpop.f32.mrb[5].mxu0 }
 0x2f4   :  { %v411_v61 = vpop.f32.mrb[6].mxu0 }
 0x2f5   :  { %v414_v62 = vadd.f32 %v409_v59, %v1293_v14  ;;  %v936_v63 = vpop.f32.mrb[7].mxu0 }
 0x2f7   :  { %v415_v1 = vpack.c.bf16 %v414_v62, %v414_v62 }
 0x2f9   :  { %954 = vmatmul.mubr.bf16.vlgmr.msra.gmra.mrb[4].mxu1 %v415_v1 }
 0x2fa   :  { %993 = vmatprep.mubr.msk.bf16.mxu1 %vm1179_vm0, %v1178_v0  ;;  %978 = vmatpush3.bf16.msra.mxu1 %v1046_v4 }
 0x2fb   :  { %979 = vmatprep.subr.bf16.mxu1 %v1178_v0 }
 0x2fe   :  { %980 = vmatpush3.bf16.msra.mxu1 %v1047_v5 }
 0x2ff   :  { %981 = vmatprep.subr.bf16.mxu1 %v1178_v0 }
 0x302   :  { %982 = vmatpush3.bf16.msra.mxu1 %v1048_v6 }
 0x303   :  { %983 = vmatprep.subr.bf16.mxu1 %v1178_v0 }
 0x306   :  { %984 = vmatpush3.bf16.msra.mxu1 %v1049_v7 }
 0x307   :  { %985 = vmatprep.subr.bf16.mxu1 %v1178_v0 }
 0x30a   :  { %986 = vmatpush3.bf16.msra.mxu1 %v1050_v8 }
 0x30b   :  { %987 = vmatprep.subr.bf16.mxu1 %v1178_v0 }
 0x30e   :  { %988 = vmatpush3.bf16.msra.mxu1 %v1051_v9 }
 0x30f   :  { %989 = vmatprep.subr.bf16.mxu1 %v1178_v0 }
 0x312   :  { %990 = vmatpush3.bf16.msra.mxu1 %v1052_v18 }
 0x313   :  { %991 = vmatprep.subr.bf16.mxu1 %v1178_v0 }
 0x316   :  { %992 = vmatpush3.bf16.msra.mxu1 %v1053_v19 }
 0x3cc   :  { %v520_v11 = vpop.f32.mrb[4].mxu1 }
 0x3cd   :  { %v521_v12 = vadd.f32 %v796_v10, %v520_v11  ;;  %v955_v13 = vpop.f32.mrb[5].mxu1 }
 0x3ce   :  { %v523_v14 = vpop.f32.mrb[6].mxu1 }
 0x3cf   :  { %v526_v15 = vmax.f32 %v521_v12, 0.0  ;;  %v956_v16 = vpop.f32.mrb[7].mxu1 }
 0x3d1   :  { %v527_v17 = vpack.c.bf16 %v526_v15, %v526_v15 }
 0x3d3   :  { %974 = vmatmul.mubr.bf16.vlgmr.msra.gmra.mrb[8].mxu0 %v527_v17 }
 0x4a6   :  { %v632_v21 = vpop.f32.mrb[8].mxu0 }
 0x4a7   :  { %v633_v22 = vadd.f32 %v805_v20, %v632_v21  ;;  %v975_v23 = vpop.f32.mrb[9].mxu0 }
 0x4a8   :  { %v635_v24 = vpop.f32.mrb[10].mxu0 }
 0x4a9   :  { %v638_v25 = vmax.f32 %v633_v22, 0.0  ;;  %v976_v26 = vpop.f32.mrb[11].mxu0 }
 0x4ab   :  { %v639_v27 = vpack.c.bf16 %v638_v25, %v638_v25 }
 0x4ad   :  { %994 = vmatmul.mubr.bf16.vlgmr.msra.gmra.mrb[8].mxu1 %v639_v27 }
 0x580   :  { %v744_v29 = vpop.f32.mrb[8].mxu1 }
 0x581   :  { %v745_v0 = vadd.f32 %v814_v28, %v744_v29  ;;  %v995_v30 = vpop.f32.mrb[9].mxu1 }
 0x582   :  { %v747_v31 = vpop.f32.mrb[10].mxu1 }
 0x583   :  { %v750_v32 = vadd.f32 %v745_v0, %v414_v62  ;;  %v996_v33 = vpop.f32.mrb[11].mxu1 }
 0x585   :  { %751 = vst [vmem:[#allocation10] sm:$0xff] %v750_v32 }
 0x586   :  { %1153 = shalt.err (!%p1150_p8)
}
 0x587   :  { %s1154_s6 = scalar_lea.hbm %s1380_s7, 128 }
 0x588   :  { %p1155_p9 = scmp.ne.s32.totalorder %s1380_s7, %s1154_s6  ;;  %p1158_p10 = scmp.lt.u32.totalorder %s1154_s6, %s1380_s7 }
 0x58a   :  { %p1160_p11 = pnand %p1158_p10, %p1155_p9 }
 0x58c   :  { %1163 = shalt.err (!%p1160_p11)
}
 0x58d   :  { %761 = dma.vmem_to_hbm [thread:$0]  %s759_s14, 128, %s1380_s7, [#allocation4]  }
 0x58e   :  { %1170 = dma.done.wait [#allocation4], 128  }
 0x58f   :  { %1171 = vsyncadd [#allocation4], 4294967168 }
 0x590   :  { %765 = vsyncpa [#allocation3], 1 }
 0x591   :  { %766 = vsyncpa [#allocation6], 1 }
 0x592   :  { %767 = vsyncpa [#allocation9], 1 }
 0x593   :  { %768 = vsyncpa [#allocation4], 1 }

</bundles_post_ra>
